<compile_context>
chip_gen: v5e
topology: v5e:2x2
jax: 0.10.0
libtpu: 0.0.40
codegen_flags: <defaults>
</compile_context>

<pallas_src>
import jax
import jax.numpy as jnp
from jax.experimental import pallas as pl
from jax.experimental.pallas import tpu as pltpu


def _round_up(x, m):
    return (x + m - 1) // m * m


def _disc_mlp_kernel(x_ref, w1_ref, b1_ref, w2_ref, b2_ref, o_ref):
    # x_ref : (tr, L)        packed activations; each row holds `pack` batch rows
    # w1_ref: (pack*H, L)    block-diagonal first-layer weight (compute dtype)
    # b1_ref: (pack*H, 1)    first-layer bias, f32, tiled per pack block
    # w2_ref: (pack, pack*H) block-diagonal second-layer weight, f32
    # b2_ref: (1,)           second-layer bias, scalar in SMEM
    # o_ref : (pack, tr)     lane-dense output slab (batch on the lane axis)

    # Layer 1 on the MXU in feature-major orientation: contract the lane dim of
    # both operands (W1bd @ x^T) so no transpose of x is needed anywhere.
    h = jax.lax.dot_general(
        w1_ref[...], x_ref[...],
        dimension_numbers=(((1,), (1,)), ((), ())),
        preferred_element_type=jnp.float32,
    )                                                  # (pack*H, tr), f32 accum
    h = jax.nn.sigmoid(h + b1_ref[...])                # broadcast (pack*H, 1)
    # TODO(synk): on v6e/v7x casting h to bf16 here would halve EUP/VPU/vst
    # cost; kept f32 so the kernel is also exact and safe on v5e (no bf16 VPU).

    # Layer 2 on the MXU as well (block-diagonal w2), instead of a VPU multiply
    # plus a 32-sublane XLU reduction.
    o = jax.lax.dot_general(
        w2_ref[...], h,
        dimension_numbers=(((1,), (0,)), ((), ())),
        preferred_element_type=jnp.float32,
    )                                                  # (pack, tr)
    o_ref[...] = jax.nn.sigmoid(o + b2_ref[0]).astype(o_ref.dtype)


def discriminator_gragan_forward(x, w1, b1, w2, b2, *, batch_tile=16384):
    """Forward pass of DiscriminatorGRAGAN.

    x : (B, output_size)              activations (f32 or bf16)
    w1: (hidden_dim, output_size)     PyTorch Linear(output_size, hidden_dim).weight
    b1: (hidden_dim,)
    w2: (1, hidden_dim)               PyTorch Linear(hidden_dim, 1).weight
    b2: (1,)
    returns (B, 1) float32
    """
    B, in_dim = x.shape
    H = w1.shape[0]

    # Only honour bf16 if the caller already has bf16 x; never insert a
    # wrapper-side downcast (that would add a full read+write pass over x).
    compute_dtype = x.dtype if x.dtype in (jnp.bfloat16, jnp.float32) else jnp.float32
    xp = x.astype(compute_dtype)

    # Lane repack factor: pack consecutive batch rows into one 128-wide lane row.
    if in_dim <= 128 and 128 % in_dim == 0:
        pack = 128 // in_dim
    else:
        pack = 1  # TODO(synk): odd feature sizes fall back to lane-padded tiles
    L = pack * in_dim

    Bp = B
    if B % pack != 0:
        # Rare case (B not a multiple of `pack`): the only wrapper-side copy.
        Bp = _round_up(B, pack)
        xp = jnp.pad(xp, ((0, Bp - B), (0, 0)))
    R = Bp // pack
    xv = xp.reshape(R, L)  # pure row-major reinterpretation (free under jit)

    # ---- tile selection -----------------------------------------------------
    # Keep the working set (double-buffered x tile + ~3 f32 h-sized temporaries
    # + double-buffered output row) under ~12 MiB so defaults work on v5e too.
    itemsize = jnp.dtype(compute_dtype).itemsize
    bytes_per_row = 2 * L * itemsize + 3 * pack * H * 4 + 2 * pack * 4
    vmem_budget = 12 * 1024 * 1024
    tr_vmem = max(128, (vmem_budget // bytes_per_row) // 128 * 128)

    if R < 256:
        # Tiny batch: single block; block dims equal the full array dims.
        tr = R
    else:
        tr_want = max(128, (int(batch_tile) // pack) // 128 * 128)
        tr_cap = (R // 128) * 128                      # keep block <= array extent
        half = _round_up(pl.cdiv(R, 2), 128)           # >=2 grid steps (megacore)
        tr = min(tr_want, tr_vmem, tr_cap, half)
    grid = (pl.cdiv(R, tr),)                           # partial last block, no pad

    # ---- weight prep (block-diagonal replication; tiny, hoist/jit in practice)
    eye = jnp.eye(pack, dtype=jnp.float32)
    w1bd = jnp.kron(eye, w1.astype(jnp.float32)).astype(compute_dtype)   # (pack*H, L)
    b1bd = jnp.tile(b1.astype(jnp.float32), (pack,)).reshape(pack * H, 1)
    w2bd = jnp.kron(eye, w2.astype(jnp.float32).reshape(1, H))           # (pack, pack*H)
    b2c = b2.reshape(1).astype(jnp.float32)                              # SMEM scalar

    out_bd = pl.pallas_call(
        _disc_mlp_kernel,
        out_shape=jax.ShapeDtypeStruct((pack, R), jnp.float32),
        grid_spec=pltpu.PrefetchScalarGridSpec(
            num_scalar_prefetch=0,
            grid=grid,
            in_specs=[
                pl.BlockSpec((tr, L), lambda i: (i, 0)),            # x tile (lane dense)
                pl.BlockSpec((pack * H, L), lambda i: (0, 0)),      # W1bd (resident)
                pl.BlockSpec((pack * H, 1), lambda i: (0, 0)),      # b1   (resident)
                pl.BlockSpec((pack, pack * H), lambda i: (0, 0)),   # w2bd (resident)
                pl.BlockSpec(memory_space=pltpu.MemorySpace.SMEM),  # b2 scalar
            ],
            out_specs=pl.BlockSpec((pack, tr), lambda i: (0, i)),   # lane-dense slab
        ),
        compiler_params=pltpu.CompilerParams(
            dimension_semantics=("parallel",),     # lets v7x shard over both TCs
            vmem_limit_bytes=32 * 1024 * 1024,     # headroom; actual use <= ~12 MiB
        ),
    )(xv, w1bd, b1bd, w2bd, b2c)

    # out_bd[k, j] is the result for batch row j*pack + k  ->  (B, 1) column.
    out = jnp.transpose(out_bd).reshape(Bp, 1)
    return out[:B]


def init_params(key, output_size, hidden_dim):
    """Deterministic xavier-normal-like init in the native PyTorch layouts."""
    k1, k2, k3, k4 = jax.random.split(key, 4)
    std1 = (2.0 / (output_size + hidden_dim)) ** 0.5
    std2 = (2.0 / (hidden_dim + 1)) ** 0.5
    w1 = jax.random.normal(k1, (hidden_dim, output_size), jnp.float32) * std1
    b1 = jax.random.normal(k2, (hidden_dim,), jnp.float32) * 0.01
    w2 = jax.random.normal(k3, (1, hidden_dim), jnp.float32) * std2
    b2 = jax.random.normal(k4, (1,), jnp.float32) * 0.01
    return w1, b1, w2, b2


if __name__ == "__main__":
    # Small shapes consistent with the module: the first Linear consumes
    # `output_size` features, so x is (batch, output_size).
    batch = 600          # multiple of pack=8 -> no wrapper pad; single block
    input_size = 16      # unused by forward (mirrors the PyTorch __init__)
    output_size = 16
    hidden_dim = 32
    num_gpu = 0          # unused

    key = jax.random.PRNGKey(0)
    kx, kp = jax.random.split(key)
    x_f32 = jax.random.normal(kx, (batch, output_size), jnp.float32)
    w1, b1, w2, b2 = init_params(kp, output_size, hidden_dim)

    fwd = jax.jit(discriminator_gragan_forward, static_argnames=("batch_tile",))

    def ref_forward(xf, w1f):
        h = jax.nn.sigmoid(
            jnp.dot(xf, w1f.T, precision=jax.lax.Precision.HIGHEST) + b1)
        return jax.nn.sigmoid(
            jnp.dot(h, w2.reshape(1, hidden_dim).T,
                    precision=jax.lax.Precision.HIGHEST) + b2)

    # f32 activation path (B % pack == 0, single block).
    out32 = jax.block_until_ready(fwd(x_f32, w1, b1, w2, b2))
    ref32 = ref_forward(x_f32, w1)
    assert out32.shape == (batch, 1)
    assert jnp.allclose(out32, ref32, atol=5e-5, rtol=5e-5)

    # bf16 activation path (caller already has bf16 x).
    x_bf16 = x_f32.astype(jnp.bfloat16)
    out16 = jax.block_until_ready(fwd(x_bf16, w1, b1, w2, b2))
    ref16 = ref_forward(x_bf16.astype(jnp.float32),
                        w1.astype(jnp.bfloat16).astype(jnp.float32))
    assert out16.shape == (batch, 1)
    assert jnp.allclose(out16, ref16, atol=2e-4, rtol=2e-4)

    # Batch not a multiple of the 8-row lane pack -> tiny (<=7 row) pad path.
    x_odd = x_f32[:37]
    out_odd = jax.block_until_ready(fwd(x_odd, w1, b1, w2, b2))
    assert out_odd.shape == (37, 1)
    assert jnp.allclose(out_odd, ref_forward(x_odd, w1), atol=5e-5, rtol=5e-5)

    # Larger batch: exercises the multi-step grid with a partial last block
    # (no wrapper jnp.pad) and the >=2-step megacore clamp.
    kx2 = jax.random.fold_in(kx, 1)
    x_big = jax.random.normal(kx2, (5000, output_size), jnp.float32)
    out_big = jax.block_until_ready(fwd(x_big, w1, b1, w2, b2))
    assert out_big.shape == (5000, 1)
    assert jnp.allclose(out_big, ref_forward(x_big, w1), atol=5e-5, rtol=5e-5)

    print("KERNEL_OK")
</pallas_src>

<mosaic_0001>
module attributes {stable_mosaic.version = 11 : i64} {
  func.func @_disc_mlp_kernel(%arg0: i32, %arg1: memref<75x128xf32, #tpu.memory_space<vmem>>, %arg2: memref<256x128xf32, #tpu.memory_space<vmem>>, %arg3: memref<256x1xf32, #tpu.memory_space<vmem>>, %arg4: memref<8x256xf32, #tpu.memory_space<vmem>>, %arg5: memref<1xf32, #tpu.memory_space<smem>>, %arg6: memref<8x75xf32, #tpu.memory_space<vmem>>) attributes {dimension_semantics = [#tpu.dimension_semantics<parallel>], iteration_bounds = array<i64: 1>, scalar_prefetch = 0 : i64, scratch_operands = 0 : i64, tpu.core_type = #tpu.core_type<tc>, window_params = [{transform_indices = @transform_0, window_bounds = array<i64: 75, 128>}, {pipeline_mode = #tpu.pipeline_mode<synchronous>, transform_indices = @transform_1, window_bounds = array<i64: 256, 128>}, {pipeline_mode = #tpu.pipeline_mode<synchronous>, transform_indices = @transform_2, window_bounds = array<i64: 256, 1>}, {pipeline_mode = #tpu.pipeline_mode<synchronous>, transform_indices = @transform_3, window_bounds = array<i64: 8, 256>}, {transform_indices = @transform_4, window_bounds = array<i64: 1>}, {transform_indices = @transform_5, window_bounds = array<i64: 8, 75>}]} {
    %c0 = arith.constant 0 : index
    %c0_0 = arith.constant 0 : index
    %0 = vector.load %arg2[%c0, %c0_0] : memref<256x128xf32, #tpu.memory_space<vmem>>, vector<256x128xf32>
    %c0_1 = arith.constant 0 : index
    %c0_2 = arith.constant 0 : index
    %1 = vector.load %arg1[%c0_1, %c0_2] : memref<75x128xf32, #tpu.memory_space<vmem>>, vector<75x128xf32>
    %cst = arith.constant dense<0.000000e+00> : vector<256x75xf32>
    %2 = tpu.matmul %0, %1, %cst {dimension_numbers = #tpu.dot_dimension_numbers<[1], [1], [0], [0], [0, 0, 1, 0], [], []>} : vector<256x128xf32>, vector<75x128xf32>, vector<256x75xf32> -> vector<256x75xf32>
    %c0_3 = arith.constant 0 : index
    %c0_4 = arith.constant 0 : index
    %3 = vector.load %arg3[%c0_3, %c0_4] : memref<256x1xf32, #tpu.memory_space<vmem>>, vector<256x1xf32>
    %4 = vector.broadcast %3 : vector<256x1xf32> to vector<256x75xf32>
    %5 = arith.addf %2, %4 : vector<256x75xf32>
    %6 = arith.negf %5 : vector<256x75xf32>
    %7 = math.exp %6 : vector<256x75xf32>
    %cst_5 = arith.constant 1.000000e+00 : f32
    %8 = vector.broadcast %cst_5 : f32 to vector<256x75xf32>
    %9 = arith.addf %8, %7 : vector<256x75xf32>
    %10 = arith.divf %8, %9 : vector<256x75xf32>
    %c0_6 = arith.constant 0 : index
    %c0_7 = arith.constant 0 : index
    %11 = vector.load %arg4[%c0_6, %c0_7] : memref<8x256xf32, #tpu.memory_space<vmem>>, vector<8x256xf32>
    %cst_8 = arith.constant dense<0.000000e+00> : vector<8x75xf32>
    %12 = tpu.matmul %11, %10, %cst_8 {dimension_numbers = #tpu.dot_dimension_numbers<[1], [0], [0], [1], [0, 0, 1, 1], [], []>} : vector<8x256xf32>, vector<256x75xf32>, vector<8x75xf32> -> vector<8x75xf32>
    %c0_9 = arith.constant 0 : index
    %13 = memref.load %arg5[%c0_9] : memref<1xf32, #tpu.memory_space<smem>>
    %14 = vector.broadcast %13 : f32 to vector<8x75xf32>
    %15 = arith.addf %12, %14 : vector<8x75xf32>
    %16 = arith.negf %15 : vector<8x75xf32>
    %17 = math.exp %16 : vector<8x75xf32>
    %cst_10 = arith.constant 1.000000e+00 : f32
    %18 = vector.broadcast %cst_10 : f32 to vector<8x75xf32>
    %19 = arith.addf %18, %17 : vector<8x75xf32>
    %20 = arith.divf %18, %19 : vector<8x75xf32>
    %c0_11 = arith.constant 0 : index
    %c0_12 = arith.constant 0 : index
    %21 = vector.load %arg6[%c0_11, %c0_12] : memref<8x75xf32, #tpu.memory_space<vmem>>, vector<8x75xf32>
    tpu.vector_store %arg6[%c0_11, %c0_12], %20 {strides = array<i32>} : memref<8x75xf32, #tpu.memory_space<vmem>>, vector<8x75xf32>,
    return
  }
  func.func @transform_0(%arg0: i32) -> (i32, i32) {
    %c0_i32 = arith.constant 0 : i32
    %c0_i32_0 = arith.constant 0 : i32
    return %arg0, %c0_i32 : i32, i32
  }
  func.func @transform_1(%arg0: i32) -> (i32, i32) {
    %c0_i32 = arith.constant 0 : i32
    %c0_i32_0 = arith.constant 0 : i32
    %c0_i32_1 = arith.constant 0 : i32
    return %c0_i32, %c0_i32_0 : i32, i32
  }
  func.func @transform_2(%arg0: i32) -> (i32, i32) {
    %c0_i32 = arith.constant 0 : i32
    %c0_i32_0 = arith.constant 0 : i32
    %c0_i32_1 = arith.constant 0 : i32
    return %c0_i32, %c0_i32_0 : i32, i32
  }
  func.func @transform_3(%arg0: i32) -> (i32, i32) {
    %c0_i32 = arith.constant 0 : i32
    %c0_i32_0 = arith.constant 0 : i32
    %c0_i32_1 = arith.constant 0 : i32
    return %c0_i32, %c0_i32_0 : i32, i32
  }
  func.func @transform_4(%arg0: i32) -> i32 {
    %c0_i32 = arith.constant 0 : i32
    %c0_i32_0 = arith.constant 0 : i32
    return %c0_i32 : i32
  }
  func.func @transform_5(%arg0: i32) -> (i32, i32) {
    %c0_i32 = arith.constant 0 : i32
    %c0_i32_0 = arith.constant 0 : i32
    return %c0_i32, %arg0 : i32, i32
  }
}

</mosaic_0001>

<bundles_post_ra>
// kernel: tile.0
= control target key start
LH: loop header
LB: loop body
LE: loop exit
PB: predicated region body
PF: predicated region fallthrough
CT: control target
= control target key end

     0   :  { %s926_s8 = smov 125   ;;  %s927_s9 = smov 123   ;;  %vm3_vm0 = vcmask 7168   ;;  %s2034_s0 = inlined_call_operand.vmem [shape: f32[8,32], index: 0, kind: input, shape index: {}]   ;;  %s2035_s1 = inlined_call_operand.vmem [shape: f32[256,1], index: 1, kind: output, shape index: {}]  }
   0x1   :  { %v969_v0 = vld [vmem:[%s2034_s0] sm:$0xff]   ;;  %s925_s0 = smov 127   ;;  %s928_s10 = smov 126  }
   0x2   :  { %20 = vrot.lane.b32.xlu0 %v969_v0, %s925_s0  ;;  %60 = vrot.lane.b32.xlu1 %v969_v0, %s926_s8  ;;  %s929_s11 = smov 124   ;;  %s930_s12 = smov 122   ;;  %4 = vst.msk [vmem:[%s2035_s1] sm:$0x1] %vm3_vm0, %v969_v0  }
   0x3   :  { %100 = vrot.lane.b32.xlu2 %v969_v0, %s927_s9  ;;  %s931_s13 = smov 121   ;;  %s932_s14 = smov 120   ;;  %639 = vst.msk [vmem:[%s2035_s1 + $0x1f] sm:$0x2] %vm3_vm0, %v969_v0  }
   0x4   :  { %s933_s15 = smov 119   ;;  %s934_s16 = smov 118   ;;  %640 = vst.msk [vmem:[%s2035_s1 + $0x3e] sm:$0x4] %vm3_vm0, %v969_v0  }
   0x5   :  { %s935_s17 = smov 117   ;;  %s936_s18 = smov 116   ;;  %641 = vst.msk [vmem:[%s2035_s1 + $0x5d] sm:$0x8] %vm3_vm0, %v969_v0  }
   0x6   :  { %s937_s19 = smov 115   ;;  %s938_s20 = smov 114   ;;  %642 = vst.msk [vmem:[%s2035_s1 + $0x7c] sm:$0x10] %vm3_vm0, %v969_v0  }
   0x7   :  { %s939_s21 = smov 113   ;;  %s940_s22 = smov 112   ;;  %643 = vst.msk [vmem:[%s2035_s1 + $0x9b] sm:$0x20] %vm3_vm0, %v969_v0  }
   0x8   :  { %s941_s23 = smov 111   ;;  %s942_s24 = smov 110   ;;  %644 = vst.msk [vmem:[%s2035_s1 + $0xba] sm:$0x40] %vm3_vm0, %v969_v0  }
   0x9   :  { %s943_s25 = smov 109   ;;  %s944_s26 = smov 108   ;;  %645 = vst.msk [vmem:[%s2035_s1 + $0xd9] sm:$0x80] %vm3_vm0, %v969_v0  }
   0xa   :  { %40 = vrot.lane.b32.xlu0 %v969_v0, %s928_s10  ;;  %80 = vrot.lane.b32.xlu1 %v969_v0, %s929_s11  ;;  %s945_s29 = smov 107  }
   0xb   :  { %120 = vrot.lane.b32.xlu2 %v969_v0, %s930_s12  ;;  %s946_s12 = smov 106  }
  0x12   :  { %140 = vrot.lane.b32.xlu0 %v969_v0, %s931_s13  ;;  %160 = vrot.lane.b32.xlu1 %v969_v0, %s932_s14  ;;  %s947_s13 = smov 105  }
  0x13   :  { %180 = vrot.lane.b32.xlu2 %v969_v0, %s933_s15 }
  0x1a   :  { %200 = vrot.lane.b32.xlu0 %v969_v0, %s934_s16  ;;  %220 = vrot.lane.b32.xlu1 %v969_v0, %s935_s17  ;;  %s948_s16 = smov 104   ;;  %s949_s17 = smov 103  }
  0x1b   :  { %240 = vrot.lane.b32.xlu2 %v969_v0, %s936_s18  ;;  %s950_s18 = smov 102  }
  0x22   :  { %260 = vrot.lane.b32.xlu0 %v969_v0, %s937_s19  ;;  %280 = vrot.lane.b32.xlu1 %v969_v0, %s938_s20  ;;  %s951_s19 = smov 101   ;;  %s952_s20 = smov 100  }
  0x23   :  { %300 = vrot.lane.b32.xlu2 %v969_v0, %s939_s21  ;;  %s953_s21 = smov 99  }
  0x2a   :  { %320 = vrot.lane.b32.xlu0 %v969_v0, %s940_s22  ;;  %340 = vrot.lane.b32.xlu1 %v969_v0, %s941_s23  ;;  %s954_s22 = smov 98   ;;  %s955_s23 = smov 97  }
  0x2b   :  { %360 = vrot.lane.b32.xlu2 %v969_v0, %s942_s24 }
  0x32   :  { %380 = vrot.lane.b32.xlu0 %v969_v0, %s943_s25  ;;  %400 = vrot.lane.b32.xlu1 %v969_v0, %s944_s26 }
  0x33   :  { %420 = vrot.lane.b32.xlu2 %v969_v0, %s945_s29 }
  0x3a   :  { %440 = vrot.lane.b32.xlu0 %v969_v0, %s946_s12  ;;  %460 = vrot.lane.b32.xlu1 %v969_v0, %s947_s13 }
  0x3b   :  { %480 = vrot.lane.b32.xlu2 %v969_v0, %s948_s16 }
  0x42   :  { %500 = vrot.lane.b32.xlu0 %v969_v0, %s949_s17  ;;  %520 = vrot.lane.b32.xlu1 %v969_v0, %s950_s18 }
  0x43   :  { %540 = vrot.lane.b32.xlu2 %v969_v0, %s951_s19 }
  0x4a   :  { %560 = vrot.lane.b32.xlu0 %v969_v0, %s952_s20  ;;  %580 = vrot.lane.b32.xlu1 %v969_v0, %s953_s21 }
  0x4b   :  { %600 = vrot.lane.b32.xlu2 %v969_v0, %s954_s22 }
  0x52   :  { %620 = vrot.lane.b32.xlu0 %v969_v0, %s955_s23 }
  0x5d   :  { %v101_v1 = vpop.permute.xlu2 %100  }
  0x5e   :  { %678 = vst.msk [vmem:[%s2035_s1 + $0x5] sm:$0x1] %vm3_vm0, %v101_v1  }
  0x5f   :  { %679 = vst.msk [vmem:[%s2035_s1 + $0x24] sm:$0x2] %vm3_vm0, %v101_v1  }
  0x60   :  { %680 = vst.msk [vmem:[%s2035_s1 + $0x43] sm:$0x4] %vm3_vm0, %v101_v1  }
  0x61   :  { %681 = vst.msk [vmem:[%s2035_s1 + $0x62] sm:$0x8] %vm3_vm0, %v101_v1  }
  0x62   :  { %682 = vst.msk [vmem:[%s2035_s1 + $0x81] sm:$0x10] %vm3_vm0, %v101_v1  }
  0x63   :  { %683 = vst.msk [vmem:[%s2035_s1 + $0xa0] sm:$0x20] %vm3_vm0, %v101_v1  }
  0x64   :  { %684 = vst.msk [vmem:[%s2035_s1 + $0xbf] sm:$0x40] %vm3_vm0, %v101_v1  }
  0x65   :  { %685 = vst.msk [vmem:[%s2035_s1 + $0xde] sm:$0x80] %vm3_vm0, %v101_v1   ;;  %v121_v2 = vpop.permute.xlu2 %120  }
  0x66   :  { %686 = vst.msk [vmem:[%s2035_s1 + $0x6] sm:$0x1] %vm3_vm0, %v121_v2  }
  0x67   :  { %687 = vst.msk [vmem:[%s2035_s1 + $0x25] sm:$0x2] %vm3_vm0, %v121_v2  }
  0x68   :  { %688 = vst.msk [vmem:[%s2035_s1 + $0x44] sm:$0x4] %vm3_vm0, %v121_v2  }
  0x69   :  { %689 = vst.msk [vmem:[%s2035_s1 + $0x63] sm:$0x8] %vm3_vm0, %v121_v2  }
  0x6a   :  { %690 = vst.msk [vmem:[%s2035_s1 + $0x82] sm:$0x10] %vm3_vm0, %v121_v2  }
  0x6b   :  { %691 = vst.msk [vmem:[%s2035_s1 + $0xa1] sm:$0x20] %vm3_vm0, %v121_v2  }
  0x6c   :  { %692 = vst.msk [vmem:[%s2035_s1 + $0xc0] sm:$0x40] %vm3_vm0, %v121_v2  }
  0x6d   :  { %693 = vst.msk [vmem:[%s2035_s1 + $0xdf] sm:$0x80] %vm3_vm0, %v121_v2   ;;  %v181_v7 = vpop.permute.xlu2 %180  }
  0x6e   :  { %710 = vst.msk [vmem:[%s2035_s1 + $0x9] sm:$0x1] %vm3_vm0, %v181_v7  }
  0x6f   :  { %711 = vst.msk [vmem:[%s2035_s1 + $0x28] sm:$0x2] %vm3_vm0, %v181_v7  }
  0x70   :  { %712 = vst.msk [vmem:[%s2035_s1 + $0x47] sm:$0x4] %vm3_vm0, %v181_v7  }
  0x71   :  { %713 = vst.msk [vmem:[%s2035_s1 + $0x66] sm:$0x8] %vm3_vm0, %v181_v7  }
  0x72   :  { %714 = vst.msk [vmem:[%s2035_s1 + $0x85] sm:$0x10] %vm3_vm0, %v181_v7  }
  0x73   :  { %715 = vst.msk [vmem:[%s2035_s1 + $0xa4] sm:$0x20] %vm3_vm0, %v181_v7  }
  0x74   :  { %v21_v3 = vpop.permute.xlu0 %20   ;;  %v61_v4 = vpop.permute.xlu1 %60   ;;  %716 = vst.msk [vmem:[%s2035_s1 + $0xc3] sm:$0x40] %vm3_vm0, %v181_v7  }
  0x75   :  { %646 = vst.msk [vmem:[%s2035_s1 + $0x1] sm:$0x1] %vm3_vm0, %v21_v3   ;;  %v241_v11 = vpop.permute.xlu2 %240  }
  0x76   :  { %647 = vst.msk [vmem:[%s2035_s1 + $0x20] sm:$0x2] %vm3_vm0, %v21_v3  }
  0x77   :  { %648 = vst.msk [vmem:[%s2035_s1 + $0x3f] sm:$0x4] %vm3_vm0, %v21_v3  }
  0x78   :  { %649 = vst.msk [vmem:[%s2035_s1 + $0x5e] sm:$0x8] %vm3_vm0, %v21_v3  }
  0x79   :  { %650 = vst.msk [vmem:[%s2035_s1 + $0x7d] sm:$0x10] %vm3_vm0, %v21_v3  }
  0x7a   :  { %651 = vst.msk [vmem:[%s2035_s1 + $0x9c] sm:$0x20] %vm3_vm0, %v21_v3  }
  0x7b   :  { %652 = vst.msk [vmem:[%s2035_s1 + $0xbb] sm:$0x40] %vm3_vm0, %v21_v3  }
  0x7c   :  { %653 = vst.msk [vmem:[%s2035_s1 + $0xda] sm:$0x80] %vm3_vm0, %v21_v3   ;;  %v41_v5 = vpop.permute.xlu0 %40   ;;  %v81_v6 = vpop.permute.xlu1 %80  }
  0x7d   :  { %662 = vst.msk [vmem:[%s2035_s1 + $0x3] sm:$0x1] %vm3_vm0, %v61_v4   ;;  %v301_v14 = vpop.permute.xlu2 %300  }
  0x7e   :  { %663 = vst.msk [vmem:[%s2035_s1 + $0x22] sm:$0x2] %vm3_vm0, %v61_v4  }
  0x7f   :  { %664 = vst.msk [vmem:[%s2035_s1 + $0x41] sm:$0x4] %vm3_vm0, %v61_v4  }
  0x80   :  { %665 = vst.msk [vmem:[%s2035_s1 + $0x60] sm:$0x8] %vm3_vm0, %v61_v4  }
  0x81   :  { %666 = vst.msk [vmem:[%s2035_s1 + $0x7f] sm:$0x10] %vm3_vm0, %v61_v4  }
  0x82   :  { %667 = vst.msk [vmem:[%s2035_s1 + $0x9e] sm:$0x20] %vm3_vm0, %v61_v4  }
  0x83   :  { %668 = vst.msk [vmem:[%s2035_s1 + $0xbd] sm:$0x40] %vm3_vm0, %v61_v4  }
  0x84   :  { %669 = vst.msk [vmem:[%s2035_s1 + $0xdc] sm:$0x80] %vm3_vm0, %v61_v4   ;;  %v141_v8 = vpop.permute.xlu0 %140   ;;  %v161_v9 = vpop.permute.xlu1 %160  }
  0x85   :  { %654 = vst.msk [vmem:[%s2035_s1 + $0x2] sm:$0x1] %vm3_vm0, %v41_v5   ;;  %v361_v17 = vpop.permute.xlu2 %360  }
  0x86   :  { %655 = vst.msk [vmem:[%s2035_s1 + $0x21] sm:$0x2] %vm3_vm0, %v41_v5  }
  0x87   :  { %656 = vst.msk [vmem:[%s2035_s1 + $0x40] sm:$0x4] %vm3_vm0, %v41_v5  }
  0x88   :  { %657 = vst.msk [vmem:[%s2035_s1 + $0x5f] sm:$0x8] %vm3_vm0, %v41_v5  }
  0x89   :  { %658 = vst.msk [vmem:[%s2035_s1 + $0x7e] sm:$0x10] %vm3_vm0, %v41_v5  }
  0x8a   :  { %659 = vst.msk [vmem:[%s2035_s1 + $0x9d] sm:$0x20] %vm3_vm0, %v41_v5  }
  0x8b   :  { %660 = vst.msk [vmem:[%s2035_s1 + $0xbc] sm:$0x40] %vm3_vm0, %v41_v5  }
  0x8c   :  { %661 = vst.msk [vmem:[%s2035_s1 + $0xdb] sm:$0x80] %vm3_vm0, %v41_v5   ;;  %v201_v10 = vpop.permute.xlu0 %200   ;;  %v221_v12 = vpop.permute.xlu1 %220  }
  0x8d   :  { %670 = vst.msk [vmem:[%s2035_s1 + $0x4] sm:$0x1] %vm3_vm0, %v81_v6   ;;  %v421_v20 = vpop.permute.xlu2 %420  }
  0x8e   :  { %671 = vst.msk [vmem:[%s2035_s1 + $0x23] sm:$0x2] %vm3_vm0, %v81_v6  }
  0x8f   :  { %672 = vst.msk [vmem:[%s2035_s1 + $0x42] sm:$0x4] %vm3_vm0, %v81_v6  }
  0x90   :  { %673 = vst.msk [vmem:[%s2035_s1 + $0x61] sm:$0x8] %vm3_vm0, %v81_v6  }
  0x91   :  { %674 = vst.msk [vmem:[%s2035_s1 + $0x80] sm:$0x10] %vm3_vm0, %v81_v6  }
  0x92   :  { %675 = vst.msk [vmem:[%s2035_s1 + $0x9f] sm:$0x20] %vm3_vm0, %v81_v6  }
  0x93   :  { %676 = vst.msk [vmem:[%s2035_s1 + $0xbe] sm:$0x40] %vm3_vm0, %v81_v6  }
  0x94   :  { %677 = vst.msk [vmem:[%s2035_s1 + $0xdd] sm:$0x80] %vm3_vm0, %v81_v6   ;;  %v261_v13 = vpop.permute.xlu0 %260   ;;  %v281_v15 = vpop.permute.xlu1 %280  }
  0x95   :  { %694 = vst.msk [vmem:[%s2035_s1 + $0x7] sm:$0x1] %vm3_vm0, %v141_v8   ;;  %v481_v23 = vpop.permute.xlu2 %480  }
  0x96   :  { %695 = vst.msk [vmem:[%s2035_s1 + $0x26] sm:$0x2] %vm3_vm0, %v141_v8  }
  0x97   :  { %696 = vst.msk [vmem:[%s2035_s1 + $0x45] sm:$0x4] %vm3_vm0, %v141_v8  }
  0x98   :  { %697 = vst.msk [vmem:[%s2035_s1 + $0x64] sm:$0x8] %vm3_vm0, %v141_v8  }
  0x99   :  { %698 = vst.msk [vmem:[%s2035_s1 + $0x83] sm:$0x10] %vm3_vm0, %v141_v8  }
  0x9a   :  { %699 = vst.msk [vmem:[%s2035_s1 + $0xa2] sm:$0x20] %vm3_vm0, %v141_v8  }
  0x9b   :  { %700 = vst.msk [vmem:[%s2035_s1 + $0xc1] sm:$0x40] %vm3_vm0, %v141_v8  }
  0x9c   :  { %701 = vst.msk [vmem:[%s2035_s1 + $0xe0] sm:$0x80] %vm3_vm0, %v141_v8   ;;  %v321_v16 = vpop.permute.xlu0 %320   ;;  %v341_v18 = vpop.permute.xlu1 %340  }
  0x9d   :  { %717 = vst.msk [vmem:[%s2035_s1 + $0xe2] sm:$0x80] %vm3_vm0, %v181_v7   ;;  %v541_v26 = vpop.permute.xlu2 %540  }
  0x9e   :  { %702 = vst.msk [vmem:[%s2035_s1 + $0x8] sm:$0x1] %vm3_vm0, %v161_v9  }
  0x9f   :  { %703 = vst.msk [vmem:[%s2035_s1 + $0x27] sm:$0x2] %vm3_vm0, %v161_v9  }
  0xa0   :  { %704 = vst.msk [vmem:[%s2035_s1 + $0x46] sm:$0x4] %vm3_vm0, %v161_v9  }
  0xa1   :  { %705 = vst.msk [vmem:[%s2035_s1 + $0x65] sm:$0x8] %vm3_vm0, %v161_v9  }
  0xa2   :  { %706 = vst.msk [vmem:[%s2035_s1 + $0x84] sm:$0x10] %vm3_vm0, %v161_v9  }
  0xa3   :  { %707 = vst.msk [vmem:[%s2035_s1 + $0xa3] sm:$0x20] %vm3_vm0, %v161_v9  }
  0xa4   :  { %708 = vst.msk [vmem:[%s2035_s1 + $0xc2] sm:$0x40] %vm3_vm0, %v161_v9   ;;  %v381_v19 = vpop.permute.xlu0 %380   ;;  %v401_v21 = vpop.permute.xlu1 %400  }
  0xa5   :  { %709 = vst.msk [vmem:[%s2035_s1 + $0xe1] sm:$0x80] %vm3_vm0, %v161_v9   ;;  %v601_v29 = vpop.permute.xlu2 %600  }
  0xa6   :  { %718 = vst.msk [vmem:[%s2035_s1 + $0xa] sm:$0x1] %vm3_vm0, %v201_v10  }
  0xa7   :  { %719 = vst.msk [vmem:[%s2035_s1 + $0x29] sm:$0x2] %vm3_vm0, %v201_v10  }
  0xa8   :  { %720 = vst.msk [vmem:[%s2035_s1 + $0x48] sm:$0x4] %vm3_vm0, %v201_v10  }
  0xa9   :  { %721 = vst.msk [vmem:[%s2035_s1 + $0x67] sm:$0x8] %vm3_vm0, %v201_v10  }
  0xaa   :  { %722 = vst.msk [vmem:[%s2035_s1 + $0x86] sm:$0x10] %vm3_vm0, %v201_v10  }
  0xab   :  { %723 = vst.msk [vmem:[%s2035_s1 + $0xa5] sm:$0x20] %vm3_vm0, %v201_v10  }
  0xac   :  { %724 = vst.msk [vmem:[%s2035_s1 + $0xc4] sm:$0x40] %vm3_vm0, %v201_v10   ;;  %v441_v22 = vpop.permute.xlu0 %440   ;;  %v461_v24 = vpop.permute.xlu1 %460  }
  0xad   :  { %725 = vst.msk [vmem:[%s2035_s1 + $0xe3] sm:$0x80] %vm3_vm0, %v201_v10  }
  0xae   :  { %734 = vst.msk [vmem:[%s2035_s1 + $0xc] sm:$0x1] %vm3_vm0, %v241_v11  }
  0xaf   :  { %735 = vst.msk [vmem:[%s2035_s1 + $0x2b] sm:$0x2] %vm3_vm0, %v241_v11  }
  0xb0   :  { %736 = vst.msk [vmem:[%s2035_s1 + $0x4a] sm:$0x4] %vm3_vm0, %v241_v11  }
  0xb1   :  { %737 = vst.msk [vmem:[%s2035_s1 + $0x69] sm:$0x8] %vm3_vm0, %v241_v11  }
  0xb2   :  { %738 = vst.msk [vmem:[%s2035_s1 + $0x88] sm:$0x10] %vm3_vm0, %v241_v11  }
  0xb3   :  { %739 = vst.msk [vmem:[%s2035_s1 + $0xa7] sm:$0x20] %vm3_vm0, %v241_v11  }
  0xb4   :  { %740 = vst.msk [vmem:[%s2035_s1 + $0xc6] sm:$0x40] %vm3_vm0, %v241_v11   ;;  %v501_v25 = vpop.permute.xlu0 %500   ;;  %v521_v27 = vpop.permute.xlu1 %520  }
  0xb5   :  { %741 = vst.msk [vmem:[%s2035_s1 + $0xe5] sm:$0x80] %vm3_vm0, %v241_v11  }
  0xb6   :  { %726 = vst.msk [vmem:[%s2035_s1 + $0xb] sm:$0x1] %vm3_vm0, %v221_v12  }
  0xb7   :  { %727 = vst.msk [vmem:[%s2035_s1 + $0x2a] sm:$0x2] %vm3_vm0, %v221_v12  }
  0xb8   :  { %728 = vst.msk [vmem:[%s2035_s1 + $0x49] sm:$0x4] %vm3_vm0, %v221_v12  }
  0xb9   :  { %729 = vst.msk [vmem:[%s2035_s1 + $0x68] sm:$0x8] %vm3_vm0, %v221_v12  }
  0xba   :  { %730 = vst.msk [vmem:[%s2035_s1 + $0x87] sm:$0x10] %vm3_vm0, %v221_v12  }
  0xbb   :  { %731 = vst.msk [vmem:[%s2035_s1 + $0xa6] sm:$0x20] %vm3_vm0, %v221_v12  }
  0xbc   :  { %732 = vst.msk [vmem:[%s2035_s1 + $0xc5] sm:$0x40] %vm3_vm0, %v221_v12   ;;  %v561_v28 = vpop.permute.xlu0 %560   ;;  %v581_v30 = vpop.permute.xlu1 %580  }
  0xbd   :  { %733 = vst.msk [vmem:[%s2035_s1 + $0xe4] sm:$0x80] %vm3_vm0, %v221_v12  }
  0xbe   :  { %742 = vst.msk [vmem:[%s2035_s1 + $0xd] sm:$0x1] %vm3_vm0, %v261_v13  }
  0xbf   :  { %743 = vst.msk [vmem:[%s2035_s1 + $0x2c] sm:$0x2] %vm3_vm0, %v261_v13  }
  0xc0   :  { %744 = vst.msk [vmem:[%s2035_s1 + $0x4b] sm:$0x4] %vm3_vm0, %v261_v13  }
  0xc1   :  { %745 = vst.msk [vmem:[%s2035_s1 + $0x6a] sm:$0x8] %vm3_vm0, %v261_v13  }
  0xc2   :  { %746 = vst.msk [vmem:[%s2035_s1 + $0x89] sm:$0x10] %vm3_vm0, %v261_v13  }
  0xc3   :  { %747 = vst.msk [vmem:[%s2035_s1 + $0xa8] sm:$0x20] %vm3_vm0, %v261_v13  }
  0xc4   :  { %748 = vst.msk [vmem:[%s2035_s1 + $0xc7] sm:$0x40] %vm3_vm0, %v261_v13   ;;  %v621_v31 = vpop.permute.xlu0 %620  }
  0xc5   :  { %749 = vst.msk [vmem:[%s2035_s1 + $0xe6] sm:$0x80] %vm3_vm0, %v261_v13  }
  0xc6   :  { %758 = vst.msk [vmem:[%s2035_s1 + $0xf] sm:$0x1] %vm3_vm0, %v301_v14  }
  0xc7   :  { %759 = vst.msk [vmem:[%s2035_s1 + $0x2e] sm:$0x2] %vm3_vm0, %v301_v14  }
  0xc8   :  { %760 = vst.msk [vmem:[%s2035_s1 + $0x4d] sm:$0x4] %vm3_vm0, %v301_v14  }
  0xc9   :  { %761 = vst.msk [vmem:[%s2035_s1 + $0x6c] sm:$0x8] %vm3_vm0, %v301_v14  }
  0xca   :  { %762 = vst.msk [vmem:[%s2035_s1 + $0x8b] sm:$0x10] %vm3_vm0, %v301_v14  }
  0xcb   :  { %763 = vst.msk [vmem:[%s2035_s1 + $0xaa] sm:$0x20] %vm3_vm0, %v301_v14  }
  0xcc   :  { %764 = vst.msk [vmem:[%s2035_s1 + $0xc9] sm:$0x40] %vm3_vm0, %v301_v14  }
  0xcd   :  { %765 = vst.msk [vmem:[%s2035_s1 + $0xe8] sm:$0x80] %vm3_vm0, %v301_v14  }
  0xce   :  { %750 = vst.msk [vmem:[%s2035_s1 + $0xe] sm:$0x1] %vm3_vm0, %v281_v15  }
  0xcf   :  { %751 = vst.msk [vmem:[%s2035_s1 + $0x2d] sm:$0x2] %vm3_vm0, %v281_v15  }
  0xd0   :  { %752 = vst.msk [vmem:[%s2035_s1 + $0x4c] sm:$0x4] %vm3_vm0, %v281_v15  }
  0xd1   :  { %753 = vst.msk [vmem:[%s2035_s1 + $0x6b] sm:$0x8] %vm3_vm0, %v281_v15  }
  0xd2   :  { %754 = vst.msk [vmem:[%s2035_s1 + $0x8a] sm:$0x10] %vm3_vm0, %v281_v15  }
  0xd3   :  { %755 = vst.msk [vmem:[%s2035_s1 + $0xa9] sm:$0x20] %vm3_vm0, %v281_v15  }
  0xd4   :  { %756 = vst.msk [vmem:[%s2035_s1 + $0xc8] sm:$0x40] %vm3_vm0, %v281_v15  }
  0xd5   :  { %757 = vst.msk [vmem:[%s2035_s1 + $0xe7] sm:$0x80] %vm3_vm0, %v281_v15  }
  0xd6   :  { %766 = vst.msk [vmem:[%s2035_s1 + $0x10] sm:$0x1] %vm3_vm0, %v321_v16  }
  0xd7   :  { %767 = vst.msk [vmem:[%s2035_s1 + $0x2f] sm:$0x2] %vm3_vm0, %v321_v16  }
  0xd8   :  { %768 = vst.msk [vmem:[%s2035_s1 + $0x4e] sm:$0x4] %vm3_vm0, %v321_v16  }
  0xd9   :  { %769 = vst.msk [vmem:[%s2035_s1 + $0x6d] sm:$0x8] %vm3_vm0, %v321_v16  }
  0xda   :  { %770 = vst.msk [vmem:[%s2035_s1 + $0x8c] sm:$0x10] %vm3_vm0, %v321_v16  }
  0xdb   :  { %771 = vst.msk [vmem:[%s2035_s1 + $0xab] sm:$0x20] %vm3_vm0, %v321_v16  }
  0xdc   :  { %772 = vst.msk [vmem:[%s2035_s1 + $0xca] sm:$0x40] %vm3_vm0, %v321_v16  }
  0xdd   :  { %773 = vst.msk [vmem:[%s2035_s1 + $0xe9] sm:$0x80] %vm3_vm0, %v321_v16  }
  0xde   :  { %782 = vst.msk [vmem:[%s2035_s1 + $0x12] sm:$0x1] %vm3_vm0, %v361_v17  }
  0xdf   :  { %783 = vst.msk [vmem:[%s2035_s1 + $0x31] sm:$0x2] %vm3_vm0, %v361_v17  }
  0xe0   :  { %784 = vst.msk [vmem:[%s2035_s1 + $0x50] sm:$0x4] %vm3_vm0, %v361_v17  }
  0xe1   :  { %785 = vst.msk [vmem:[%s2035_s1 + $0x6f] sm:$0x8] %vm3_vm0, %v361_v17  }
  0xe2   :  { %786 = vst.msk [vmem:[%s2035_s1 + $0x8e] sm:$0x10] %vm3_vm0, %v361_v17  }
  0xe3   :  { %787 = vst.msk [vmem:[%s2035_s1 + $0xad] sm:$0x20] %vm3_vm0, %v361_v17  }
  0xe4   :  { %788 = vst.msk [vmem:[%s2035_s1 + $0xcc] sm:$0x40] %vm3_vm0, %v361_v17  }
  0xe5   :  { %789 = vst.msk [vmem:[%s2035_s1 + $0xeb] sm:$0x80] %vm3_vm0, %v361_v17  }
  0xe6   :  { %774 = vst.msk [vmem:[%s2035_s1 + $0x11] sm:$0x1] %vm3_vm0, %v341_v18  }
  0xe7   :  { %775 = vst.msk [vmem:[%s2035_s1 + $0x30] sm:$0x2] %vm3_vm0, %v341_v18  }
  0xe8   :  { %776 = vst.msk [vmem:[%s2035_s1 + $0x4f] sm:$0x4] %vm3_vm0, %v341_v18  }
  0xe9   :  { %777 = vst.msk [vmem:[%s2035_s1 + $0x6e] sm:$0x8] %vm3_vm0, %v341_v18  }
  0xea   :  { %778 = vst.msk [vmem:[%s2035_s1 + $0x8d] sm:$0x10] %vm3_vm0, %v341_v18  }
  0xeb   :  { %779 = vst.msk [vmem:[%s2035_s1 + $0xac] sm:$0x20] %vm3_vm0, %v341_v18  }
  0xec   :  { %780 = vst.msk [vmem:[%s2035_s1 + $0xcb] sm:$0x40] %vm3_vm0, %v341_v18  }
  0xed   :  { %781 = vst.msk [vmem:[%s2035_s1 + $0xea] sm:$0x80] %vm3_vm0, %v341_v18  }
  0xee   :  { %790 = vst.msk [vmem:[%s2035_s1 + $0x13] sm:$0x1] %vm3_vm0, %v381_v19  }
  0xef   :  { %791 = vst.msk [vmem:[%s2035_s1 + $0x32] sm:$0x2] %vm3_vm0, %v381_v19  }
  0xf0   :  { %792 = vst.msk [vmem:[%s2035_s1 + $0x51] sm:$0x4] %vm3_vm0, %v381_v19  }
  0xf1   :  { %793 = vst.msk [vmem:[%s2035_s1 + $0x70] sm:$0x8] %vm3_vm0, %v381_v19  }
  0xf2   :  { %794 = vst.msk [vmem:[%s2035_s1 + $0x8f] sm:$0x10] %vm3_vm0, %v381_v19  }
  0xf3   :  { %795 = vst.msk [vmem:[%s2035_s1 + $0xae] sm:$0x20] %vm3_vm0, %v381_v19  }
  0xf4   :  { %796 = vst.msk [vmem:[%s2035_s1 + $0xcd] sm:$0x40] %vm3_vm0, %v381_v19  }
  0xf5   :  { %797 = vst.msk [vmem:[%s2035_s1 + $0xec] sm:$0x80] %vm3_vm0, %v381_v19  }
  0xf6   :  { %806 = vst.msk [vmem:[%s2035_s1 + $0x15] sm:$0x1] %vm3_vm0, %v421_v20  }
  0xf7   :  { %807 = vst.msk [vmem:[%s2035_s1 + $0x34] sm:$0x2] %vm3_vm0, %v421_v20  }
  0xf8   :  { %808 = vst.msk [vmem:[%s2035_s1 + $0x53] sm:$0x4] %vm3_vm0, %v421_v20  }
  0xf9   :  { %809 = vst.msk [vmem:[%s2035_s1 + $0x72] sm:$0x8] %vm3_vm0, %v421_v20  }
  0xfa   :  { %810 = vst.msk [vmem:[%s2035_s1 + $0x91] sm:$0x10] %vm3_vm0, %v421_v20  }
  0xfb   :  { %811 = vst.msk [vmem:[%s2035_s1 + $0xb0] sm:$0x20] %vm3_vm0, %v421_v20  }
  0xfc   :  { %812 = vst.msk [vmem:[%s2035_s1 + $0xcf] sm:$0x40] %vm3_vm0, %v421_v20  }
  0xfd   :  { %813 = vst.msk [vmem:[%s2035_s1 + $0xee] sm:$0x80] %vm3_vm0, %v421_v20  }
  0xfe   :  { %798 = vst.msk [vmem:[%s2035_s1 + $0x14] sm:$0x1] %vm3_vm0, %v401_v21  }
  0xff   :  { %799 = vst.msk [vmem:[%s2035_s1 + $0x33] sm:$0x2] %vm3_vm0, %v401_v21  }
 0x100   :  { %800 = vst.msk [vmem:[%s2035_s1 + $0x52] sm:$0x4] %vm3_vm0, %v401_v21  }
 0x101   :  { %801 = vst.msk [vmem:[%s2035_s1 + $0x71] sm:$0x8] %vm3_vm0, %v401_v21  }
 0x102   :  { %802 = vst.msk [vmem:[%s2035_s1 + $0x90] sm:$0x10] %vm3_vm0, %v401_v21  }
 0x103   :  { %803 = vst.msk [vmem:[%s2035_s1 + $0xaf] sm:$0x20] %vm3_vm0, %v401_v21  }
 0x104   :  { %804 = vst.msk [vmem:[%s2035_s1 + $0xce] sm:$0x40] %vm3_vm0, %v401_v21  }
 0x105   :  { %805 = vst.msk [vmem:[%s2035_s1 + $0xed] sm:$0x80] %vm3_vm0, %v401_v21  }
 0x106   :  { %814 = vst.msk [vmem:[%s2035_s1 + $0x16] sm:$0x1] %vm3_vm0, %v441_v22  }
 0x107   :  { %815 = vst.msk [vmem:[%s2035_s1 + $0x35] sm:$0x2] %vm3_vm0, %v441_v22  }
 0x108   :  { %816 = vst.msk [vmem:[%s2035_s1 + $0x54] sm:$0x4] %vm3_vm0, %v441_v22  }
 0x109   :  { %817 = vst.msk [vmem:[%s2035_s1 + $0x73] sm:$0x8] %vm3_vm0, %v441_v22  }
 0x10a   :  { %818 = vst.msk [vmem:[%s2035_s1 + $0x92] sm:$0x10] %vm3_vm0, %v441_v22  }
 0x10b   :  { %819 = vst.msk [vmem:[%s2035_s1 + $0xb1] sm:$0x20] %vm3_vm0, %v441_v22  }
 0x10c   :  { %820 = vst.msk [vmem:[%s2035_s1 + $0xd0] sm:$0x40] %vm3_vm0, %v441_v22  }
 0x10d   :  { %821 = vst.msk [vmem:[%s2035_s1 + $0xef] sm:$0x80] %vm3_vm0, %v441_v22  }
 0x10e   :  { %830 = vst.msk [vmem:[%s2035_s1 + $0x18] sm:$0x1] %vm3_vm0, %v481_v23  }
 0x10f   :  { %831 = vst.msk [vmem:[%s2035_s1 + $0x37] sm:$0x2] %vm3_vm0, %v481_v23  }
 0x110   :  { %832 = vst.msk [vmem:[%s2035_s1 + $0x56] sm:$0x4] %vm3_vm0, %v481_v23  }
 0x111   :  { %833 = vst.msk [vmem:[%s2035_s1 + $0x75] sm:$0x8] %vm3_vm0, %v481_v23  }
 0x112   :  { %834 = vst.msk [vmem:[%s2035_s1 + $0x94] sm:$0x10] %vm3_vm0, %v481_v23  }
 0x113   :  { %835 = vst.msk [vmem:[%s2035_s1 + $0xb3] sm:$0x20] %vm3_vm0, %v481_v23  }
 0x114   :  { %836 = vst.msk [vmem:[%s2035_s1 + $0xd2] sm:$0x40] %vm3_vm0, %v481_v23  }
 0x115   :  { %837 = vst.msk [vmem:[%s2035_s1 + $0xf1] sm:$0x80] %vm3_vm0, %v481_v23  }
 0x116   :  { %822 = vst.msk [vmem:[%s2035_s1 + $0x17] sm:$0x1] %vm3_vm0, %v461_v24  }
 0x117   :  { %823 = vst.msk [vmem:[%s2035_s1 + $0x36] sm:$0x2] %vm3_vm0, %v461_v24  }
 0x118   :  { %824 = vst.msk [vmem:[%s2035_s1 + $0x55] sm:$0x4] %vm3_vm0, %v461_v24  }
 0x119   :  { %825 = vst.msk [vmem:[%s2035_s1 + $0x74] sm:$0x8] %vm3_vm0, %v461_v24  }
 0x11a   :  { %826 = vst.msk [vmem:[%s2035_s1 + $0x93] sm:$0x10] %vm3_vm0, %v461_v24  }
 0x11b   :  { %827 = vst.msk [vmem:[%s2035_s1 + $0xb2] sm:$0x20] %vm3_vm0, %v461_v24  }
 0x11c   :  { %828 = vst.msk [vmem:[%s2035_s1 + $0xd1] sm:$0x40] %vm3_vm0, %v461_v24  }
 0x11d   :  { %829 = vst.msk [vmem:[%s2035_s1 + $0xf0] sm:$0x80] %vm3_vm0, %v461_v24  }
 0x11e   :  { %838 = vst.msk [vmem:[%s2035_s1 + $0x19] sm:$0x1] %vm3_vm0, %v501_v25  }
 0x11f   :  { %839 = vst.msk [vmem:[%s2035_s1 + $0x38] sm:$0x2] %vm3_vm0, %v501_v25  }
 0x120   :  { %840 = vst.msk [vmem:[%s2035_s1 + $0x57] sm:$0x4] %vm3_vm0, %v501_v25  }
 0x121   :  { %841 = vst.msk [vmem:[%s2035_s1 + $0x76] sm:$0x8] %vm3_vm0, %v501_v25  }
 0x122   :  { %842 = vst.msk [vmem:[%s2035_s1 + $0x95] sm:$0x10] %vm3_vm0, %v501_v25  }
 0x123   :  { %843 = vst.msk [vmem:[%s2035_s1 + $0xb4] sm:$0x20] %vm3_vm0, %v501_v25  }
 0x124   :  { %844 = vst.msk [vmem:[%s2035_s1 + $0xd3] sm:$0x40] %vm3_vm0, %v501_v25  }
 0x125   :  { %845 = vst.msk [vmem:[%s2035_s1 + $0xf2] sm:$0x80] %vm3_vm0, %v501_v25  }
 0x126   :  { %854 = vst.msk [vmem:[%s2035_s1 + $0x1b] sm:$0x1] %vm3_vm0, %v541_v26  }
 0x127   :  { %855 = vst.msk [vmem:[%s2035_s1 + $0x3a] sm:$0x2] %vm3_vm0, %v541_v26  }
 0x128   :  { %856 = vst.msk [vmem:[%s2035_s1 + $0x59] sm:$0x4] %vm3_vm0, %v541_v26  }
 0x129   :  { %857 = vst.msk [vmem:[%s2035_s1 + $0x78] sm:$0x8] %vm3_vm0, %v541_v26  }
 0x12a   :  { %858 = vst.msk [vmem:[%s2035_s1 + $0x97] sm:$0x10] %vm3_vm0, %v541_v26  }
 0x12b   :  { %859 = vst.msk [vmem:[%s2035_s1 + $0xb6] sm:$0x20] %vm3_vm0, %v541_v26  }
 0x12c   :  { %860 = vst.msk [vmem:[%s2035_s1 + $0xd5] sm:$0x40] %vm3_vm0, %v541_v26  }
 0x12d   :  { %861 = vst.msk [vmem:[%s2035_s1 + $0xf4] sm:$0x80] %vm3_vm0, %v541_v26  }
 0x12e   :  { %846 = vst.msk [vmem:[%s2035_s1 + $0x1a] sm:$0x1] %vm3_vm0, %v521_v27  }
 0x12f   :  { %847 = vst.msk [vmem:[%s2035_s1 + $0x39] sm:$0x2] %vm3_vm0, %v521_v27  }
 0x130   :  { %848 = vst.msk [vmem:[%s2035_s1 + $0x58] sm:$0x4] %vm3_vm0, %v521_v27  }
 0x131   :  { %849 = vst.msk [vmem:[%s2035_s1 + $0x77] sm:$0x8] %vm3_vm0, %v521_v27  }
 0x132   :  { %850 = vst.msk [vmem:[%s2035_s1 + $0x96] sm:$0x10] %vm3_vm0, %v521_v27  }
 0x133   :  { %851 = vst.msk [vmem:[%s2035_s1 + $0xb5] sm:$0x20] %vm3_vm0, %v521_v27  }
 0x134   :  { %852 = vst.msk [vmem:[%s2035_s1 + $0xd4] sm:$0x40] %vm3_vm0, %v521_v27  }
 0x135   :  { %853 = vst.msk [vmem:[%s2035_s1 + $0xf3] sm:$0x80] %vm3_vm0, %v521_v27  }
 0x136   :  { %862 = vst.msk [vmem:[%s2035_s1 + $0x1c] sm:$0x1] %vm3_vm0, %v561_v28  }
 0x137   :  { %863 = vst.msk [vmem:[%s2035_s1 + $0x3b] sm:$0x2] %vm3_vm0, %v561_v28  }
 0x138   :  { %864 = vst.msk [vmem:[%s2035_s1 + $0x5a] sm:$0x4] %vm3_vm0, %v561_v28  }
 0x139   :  { %865 = vst.msk [vmem:[%s2035_s1 + $0x79] sm:$0x8] %vm3_vm0, %v561_v28  }
 0x13a   :  { %866 = vst.msk [vmem:[%s2035_s1 + $0x98] sm:$0x10] %vm3_vm0, %v561_v28  }
 0x13b   :  { %867 = vst.msk [vmem:[%s2035_s1 + $0xb7] sm:$0x20] %vm3_vm0, %v561_v28  }
 0x13c   :  { %868 = vst.msk [vmem:[%s2035_s1 + $0xd6] sm:$0x40] %vm3_vm0, %v561_v28  }
 0x13d   :  { %869 = vst.msk [vmem:[%s2035_s1 + $0xf5] sm:$0x80] %vm3_vm0, %v561_v28  }
 0x13e   :  { %878 = vst.msk [vmem:[%s2035_s1 + $0x1e] sm:$0x1] %vm3_vm0, %v601_v29  }
 0x13f   :  { %879 = vst.msk [vmem:[%s2035_s1 + $0x3d] sm:$0x2] %vm3_vm0, %v601_v29  }
 0x140   :  { %880 = vst.msk [vmem:[%s2035_s1 + $0x5c] sm:$0x4] %vm3_vm0, %v601_v29  }
 0x141   :  { %881 = vst.msk [vmem:[%s2035_s1 + $0x7b] sm:$0x8] %vm3_vm0, %v601_v29  }
 0x142   :  { %882 = vst.msk [vmem:[%s2035_s1 + $0x9a] sm:$0x10] %vm3_vm0, %v601_v29  }
 0x143   :  { %883 = vst.msk [vmem:[%s2035_s1 + $0xb9] sm:$0x20] %vm3_vm0, %v601_v29  }
 0x144   :  { %884 = vst.msk [vmem:[%s2035_s1 + $0xd8] sm:$0x40] %vm3_vm0, %v601_v29  }
 0x145   :  { %885 = vst.msk [vmem:[%s2035_s1 + $0xf7] sm:$0x80] %vm3_vm0, %v601_v29  }
 0x146   :  { %870 = vst.msk [vmem:[%s2035_s1 + $0x1d] sm:$0x1] %vm3_vm0, %v581_v30  }
 0x147   :  { %871 = vst.msk [vmem:[%s2035_s1 + $0x3c] sm:$0x2] %vm3_vm0, %v581_v30  }
 0x148   :  { %872 = vst.msk [vmem:[%s2035_s1 + $0x5b] sm:$0x4] %vm3_vm0, %v581_v30  }
 0x149   :  { %873 = vst.msk [vmem:[%s2035_s1 + $0x7a] sm:$0x8] %vm3_vm0, %v581_v30  }
 0x14a   :  { %874 = vst.msk [vmem:[%s2035_s1 + $0x99] sm:$0x10] %vm3_vm0, %v581_v30  }
 0x14b   :  { %875 = vst.msk [vmem:[%s2035_s1 + $0xb8] sm:$0x20] %vm3_vm0, %v581_v30  }
 0x14c   :  { %876 = vst.msk [vmem:[%s2035_s1 + $0xd7] sm:$0x40] %vm3_vm0, %v581_v30  }
 0x14d   :  { %877 = vst.msk [vmem:[%s2035_s1 + $0xf6] sm:$0x80] %vm3_vm0, %v581_v30  }
 0x14e   :  { %886 = vst.msk [vmem:[%s2035_s1 + $0x1f] sm:$0x1] %vm3_vm0, %v621_v31  }
 0x14f   :  { %887 = vst.msk [vmem:[%s2035_s1 + $0x3e] sm:$0x2] %vm3_vm0, %v621_v31  }
 0x150   :  { %888 = vst.msk [vmem:[%s2035_s1 + $0x5d] sm:$0x4] %vm3_vm0, %v621_v31  }
 0x151   :  { %889 = vst.msk [vmem:[%s2035_s1 + $0x7c] sm:$0x8] %vm3_vm0, %v621_v31  }
 0x152   :  { %890 = vst.msk [vmem:[%s2035_s1 + $0x9b] sm:$0x10] %vm3_vm0, %v621_v31  }
 0x153   :  { %891 = vst.msk [vmem:[%s2035_s1 + $0xba] sm:$0x20] %vm3_vm0, %v621_v31  }
 0x154   :  { %892 = vst.msk [vmem:[%s2035_s1 + $0xd9] sm:$0x40] %vm3_vm0, %v621_v31  }
 0x155   :  { %893 = vst.msk [vmem:[%s2035_s1 + $0xf8] sm:$0x80] %vm3_vm0, %v621_v31  }

// kernel: discriminator_gragan_forward.1
= control target key start
LH: loop header
LB: loop body
LE: loop exit
PB: predicated region body
PF: predicated region fallthrough
CT: control target
= control target key end

     0   :  { %v1244_v0 = vmov 0   ;;  %s2413_s2 = inlined_call_operand.vmem [shape: f32[256,1], index: 2, kind: input, shape index: {}]   ;;  %s2414_s0 = inlined_call_operand.vmem [shape: f32[75,128], index: 0, kind: input, shape index: {}]   ;;  %s2415_s1 = inlined_call_operand.vmem [shape: f32[256,128], index: 1, kind: input, shape index: {}]   ;;  %s2416_s3 = inlined_call_operand.vmem [shape: f32[8,256], index: 3, kind: input, shape index: {}]   ;;  %s2417_s4 = inlined_call_operand.<no memory space> [shape: f32[1], index: 4, kind: input, shape index: {}]   ;;  %s2418_s5 = inlined_call_operand.vmem [shape: f32[8,75], index: 5, kind: output, shape index: {}]  }
   0x1   :  { %1110 = vset.pattern.permute.xlu1 %v1244_v0  ;;  %1109 = vset.pattern.permute.xlu0 %v1244_v0  ;;  %v94_v1 = vld [vmem:[%s2413_s2 + $0xf8] sm:$0xff]  ;;  %v62_v3 = vld [vmem:[%s2414_s0 + $0x48] sm:$0x7]  ;;  %v61_v4 = vld [vmem:[%s2414_s0 + $0x40] sm:$0xff] }
   0x2   :  { %v78_v2 = vld [vmem:[%s2413_s2 + $0x78] sm:$0xff]  ;;  %252 = vperm.xlu0 %1109, %v94_v1   ;;  %261 = vmatpush.xpose.msra.mxu0 %v62_v3  ;;  %v93_v5 = vld [vmem:[%s2413_s2 + $0xf0] sm:$0xff]  ;;  %v92_v6 = vld [vmem:[%s2413_s2 + $0xe8] sm:$0xff] }
   0x3   :  { %172 = vperm.xlu1 %1110, %v78_v2   ;;  %1078 = vmatpush.xpose.msra.mxu1 %v62_v3  ;;  %v77_v7 = vld [vmem:[%s2413_s2 + $0x70] sm:$0xff]  ;;  %v60_v8 = vld [vmem:[%s2414_s0 + $0x38] sm:$0xff]  ;;  %v91_v10 = vld [vmem:[%s2413_s2 + $0xe0] sm:$0xff] }
   0x4   :  { %1079 = vmatpush.xpose.msra.mxu2 %v62_v3  ;;  %1080 = vmatpush.xpose.msra.mxu3 %v62_v3  ;;  %v59_v9 = vld [vmem:[%s2414_s0 + $0x30] sm:$0xff]  ;;  %v90_v11 = vld [vmem:[%s2413_s2 + $0xd8] sm:$0xff]  ;;  %v76_v12 = vld [vmem:[%s2413_s2 + $0x68] sm:$0xff] }
   0x5   :  { %1111 = vset.pattern.permute.xlu2 %v1244_v0  ;;  %v58_v13 = vld [vmem:[%s2414_s0 + $0x28] sm:$0xff]  ;;  %v57_v14 = vld [vmem:[%s2414_s0 + $0x20] sm:$0xff]  ;;  %v89_v16 = vld [vmem:[%s2413_s2 + $0xd0] sm:$0xff] }
   0x6   :  { %262 = vmatpush.xpose.msra.mxu0 %v61_v4  ;;  %167 = vperm.xlu2 %1111, %v77_v7   ;;  %v75_v15 = vld [vmem:[%s2413_s2 + $0x60] sm:$0xff]  ;;  %v74_v17 = vld [vmem:[%s2413_s2 + $0x58] sm:$0xff]  ;;  %v55_v19 = vld [vmem:[%s2414_s0 + $0x10] sm:$0xff] }
   0x7   :  { %1081 = vmatpush.xpose.msra.mxu1 %v61_v4  ;;  %v56_v18 = vld [vmem:[%s2414_s0 + $0x18] sm:$0xff]  ;;  %v88_v20 = vld [vmem:[%s2413_s2 + $0xc8] sm:$0xff]  ;;  %v87_v21 = vld [vmem:[%s2413_s2 + $0xc0] sm:$0xff] }
   0x8   :  { %1082 = vmatpush.xpose.msra.mxu2 %v61_v4  ;;  %1083 = vmatpush.xpose.msra.mxu3 %v61_v4  ;;  %v73_v22 = vld [vmem:[%s2413_s2 + $0x50] sm:$0xff]  ;;  %v54_v23 = vld [vmem:[%s2414_s0 + $0x8] sm:$0xff]  ;;  %v53_v24 = vld [vmem:[%s2414_s0] sm:$0xff] }
   0x9   :  { %v72_v25 = vld [vmem:[%s2413_s2 + $0x48] sm:$0xff]  ;;  %v21_v26 = vld [vmem:[%s2415_s1] sm:$0xff]  ;;  %v44_v29 = vld [vmem:[%s2415_s1 + $0xb8] sm:$0xff] }
   0xa   :  { %247 = vperm.xlu0 %1109, %v93_v5   ;;  %263 = vmatpush.xpose.msra.mxu0 %v60_v8  ;;  %v29_v27 = vld [vmem:[%s2415_s1 + $0x40] sm:$0xff]  ;;  %v86_v30 = vld [vmem:[%s2413_s2 + $0xb8] sm:$0xff]  ;;  %v85_v32 = vld [vmem:[%s2413_s2 + $0xb0] sm:$0xff] }
   0xb   :  { %242 = vperm.xlu1 %1110, %v92_v6   ;;  %1084 = vmatpush.xpose.msra.mxu1 %v60_v8  ;;  %v37_v28 = vld [vmem:[%s2415_s1 + $0x80] sm:$0xff]  ;;  %v22_v33 = vld [vmem:[%s2415_s1 + $0x8] sm:$0xff]  ;;  %v70_v38 = vld [vmem:[%s2413_s2 + $0x38] sm:$0xff] }
   0xc   :  { %1085 = vmatpush.xpose.msra.mxu2 %v60_v8  ;;  %1086 = vmatpush.xpose.msra.mxu3 %v60_v8  ;;  %v71_v31 = vld [vmem:[%s2413_s2 + $0x40] sm:$0xff]  ;;  %v30_v34 = vld [vmem:[%s2415_s1 + $0x48] sm:$0xff]  ;;  %v69_v39 = vld [vmem:[%s2413_s2 + $0x30] sm:$0xff] }
   0xd   :  { %v38_v35 = vld [vmem:[%s2415_s1 + $0x88] sm:$0xff]  ;;  %v45_v36 = vld [vmem:[%s2415_s1 + $0xc0] sm:$0xff]  ;;  %v23_v40 = vld [vmem:[%s2415_s1 + $0x10] sm:$0xff] }
   0xe   :  { %264 = vmatpush.xpose.msra.mxu0 %v59_v9  ;;  %237 = vperm.xlu2 %1111, %v91_v10   ;;  %v84_v37 = vld [vmem:[%s2413_s2 + $0xa8] sm:$0xff]  ;;  %v31_v41 = vld [vmem:[%s2415_s1 + $0x50] sm:$0xff]  ;;  %v83_v44 = vld [vmem:[%s2413_s2 + $0xa0] sm:$0xff] }
   0xf   :  { %1087 = vmatpush.xpose.msra.mxu1 %v59_v9  ;;  %v39_v42 = vld [vmem:[%s2415_s1 + $0x90] sm:$0xff]  ;;  %v46_v43 = vld [vmem:[%s2415_s1 + $0xc8] sm:$0xff]  ;;  %v82_v46 = vld [vmem:[%s2413_s2 + $0x98] sm:$0xff] }
  0x10   :  { %1088 = vmatpush.xpose.msra.mxu2 %v59_v9  ;;  %1089 = vmatpush.xpose.msra.mxu3 %v59_v9  ;;  %v68_v45 = vld [vmem:[%s2413_s2 + $0x28] sm:$0xff]  ;;  %v24_v47 = vld [vmem:[%s2415_s1 + $0x18] sm:$0xff]  ;;  %v47_v50 = vld [vmem:[%s2415_s1 + $0xd0] sm:$0xff] }
  0x11   :  { %v32_v48 = vld [vmem:[%s2415_s1 + $0x58] sm:$0xff]  ;;  %v81_v51 = vld [vmem:[%s2413_s2 + $0x90] sm:$0xff]  ;;  %v67_v52 = vld [vmem:[%s2413_s2 + $0x20] sm:$0xff] }
  0x12   :  { %162 = vperm.xlu0 %1109, %v76_v12   ;;  %265 = vmatpush.xpose.msra.mxu0 %v58_v13  ;;  %v40_v49 = vld [vmem:[%s2415_s1 + $0x98] sm:$0xff]  ;;  %v25_v54 = vld [vmem:[%s2415_s1 + $0x20] sm:$0xff]  ;;  %v80_v58 = vld [vmem:[%s2413_s2 + $0x88] sm:$0xff] }
  0x13   :  { %232 = vperm.xlu1 %1110, %v90_v11   ;;  %1090 = vmatpush.xpose.msra.mxu1 %v58_v13  ;;  %v66_v53 = vld [vmem:[%s2413_s2 + $0x18] sm:$0xff]  ;;  %v33_v55 = vld [vmem:[%s2415_s1 + $0x60] sm:$0xff]  ;;  %v65_v59 = vld [vmem:[%s2413_s2 + $0x10] sm:$0xff] }
  0x14   :  { %1091 = vmatpush.xpose.msra.mxu2 %v58_v13  ;;  %1092 = vmatpush.xpose.msra.mxu3 %v58_v13  ;;  %v41_v56 = vld [vmem:[%s2415_s1 + $0xa0] sm:$0xff]  ;;  %v48_v57 = vld [vmem:[%s2415_s1 + $0xd8] sm:$0xff]  ;;  %v26_v61 = vld [vmem:[%s2415_s1 + $0x28] sm:$0xff] }
  0x15   :  { %v79_v60 = vld [vmem:[%s2413_s2 + $0x80] sm:$0xff]  ;;  %v34_v62 = vld [vmem:[%s2415_s1 + $0x68] sm:$0xff]  ;;  %v27_v3 = vld [vmem:[%s2415_s1 + $0x30] sm:$0xff] }
  0x16   :  { %266 = vmatpush.xpose.msra.mxu0 %v57_v14  ;;  %157 = vperm.xlu2 %1111, %v75_v15   ;;  %v42_v63 = vld [vmem:[%s2415_s1 + $0xa8] sm:$0xff]  ;;  %v49_v0 = vld [vmem:[%s2415_s1 + $0xe0] sm:$0xff]  ;;  %v35_v4 = vld [vmem:[%s2415_s1 + $0x70] sm:$0xff] }
  0x17   :  { %1093 = vmatpush.xpose.msra.mxu1 %v57_v14  ;;  %v64_v1 = vld [vmem:[%s2413_s2 + $0x8] sm:$0xff]  ;;  %v63_v2 = vld [vmem:[%s2413_s2] sm:$0xff]  ;;  %v43_v5 = vld [vmem:[%s2415_s1 + $0xb0] sm:$0xff] }
  0x18   :  { %1094 = vmatpush.xpose.msra.mxu2 %v57_v14  ;;  %1095 = vmatpush.xpose.msra.mxu3 %v57_v14  ;;  %v50_v6 = vld [vmem:[%s2415_s1 + $0xe8] sm:$0xff]  ;;  %v28_v7 = vld [vmem:[%s2415_s1 + $0x38] sm:$0xff]  ;;  %v51_v9 = vld [vmem:[%s2415_s1 + $0xf0] sm:$0xff] }
  0x19   :  { %v36_v8 = vld [vmem:[%s2415_s1 + $0x78] sm:$0xff] }
  0x1a   :  { %227 = vperm.xlu0 %1109, %v89_v16   ;;  %267 = vmatpush.xpose.msra.mxu0 %v56_v18  ;;  %v52_v11 = vld [vmem:[%s2415_s1 + $0xf8] sm:$0xff] }
  0x1b   :  { %152 = vperm.xlu1 %1110, %v74_v17   ;;  %1096 = vmatpush.xpose.msra.mxu1 %v56_v18 }
  0x1c   :  { %1097 = vmatpush.xpose.msra.mxu2 %v56_v18  ;;  %1098 = vmatpush.xpose.msra.mxu3 %v56_v18 }
  0x1e   :  { %268 = vmatpush.xpose.msra.mxu0 %v55_v19  ;;  %222 = vperm.xlu2 %1111, %v88_v20  }
  0x1f   :  { %1099 = vmatpush.xpose.msra.mxu1 %v55_v19 }
  0x20   :  { %1100 = vmatpush.xpose.msra.mxu2 %v55_v19  ;;  %1101 = vmatpush.xpose.msra.mxu3 %v55_v19 }
  0x22   :  { %147 = vperm.xlu0 %1109, %v73_v22   ;;  %269 = vmatpush.xpose.msra.mxu0 %v54_v23 }
  0x23   :  { %217 = vperm.xlu1 %1110, %v87_v21   ;;  %1102 = vmatpush.xpose.msra.mxu1 %v54_v23 }
  0x24   :  { %1103 = vmatpush.xpose.msra.mxu2 %v54_v23  ;;  %1104 = vmatpush.xpose.msra.mxu3 %v54_v23 }
  0x26   :  { %270 = vmatpush.xpose.msra.mxu0 %v53_v24  ;;  %142 = vperm.xlu2 %1111, %v72_v25  }
  0x27   :  { %1105 = vmatpush.xpose.msra.mxu1 %v53_v24 }
  0x28   :  { %1106 = vmatpush.xpose.msra.mxu2 %v53_v24  ;;  %1107 = vmatpush.xpose.msra.mxu3 %v53_v24 }
  0x29   :  { %271 = vmatmul.f32.vlgmr.msra.gmra.mxu0 %v21_v26 }
  0x2a   :  { %295 = vmatmul.f32.vlgmr.msra.gmra.mxu1 %v29_v27  ;;  %212 = vperm.xlu0 %1109, %v86_v30  }
  0x2b   :  { %319 = vmatmul.f32.vlgmr.msra.gmra.mxu2 %v37_v28  ;;  %340 = vmatmul.f32.vlgmr.msra.gmra.mxu3 %v44_v29 }
  0x2c   :  { %137 = vperm.xlu1 %1110, %v71_v31  }
  0x2e   :  { %207 = vperm.xlu2 %1111, %v85_v32  }
  0x31   :  { %274 = vmatmul.f32.gmra.mxu0 %v22_v33 }
  0x32   :  { %298 = vmatmul.f32.gmra.mxu1 %v30_v34  ;;  %132 = vperm.xlu0 %1109, %v70_v38  }
  0x33   :  { %322 = vmatmul.f32.gmra.mxu2 %v38_v35  ;;  %343 = vmatmul.f32.gmra.mxu3 %v45_v36 }
  0x34   :  { %202 = vperm.xlu1 %1110, %v84_v37  }
  0x36   :  { %127 = vperm.xlu2 %1111, %v69_v39  }
  0x39   :  { %277 = vmatmul.f32.gmra.mxu0 %v23_v40 }
  0x3a   :  { %301 = vmatmul.f32.gmra.mxu1 %v31_v41  ;;  %197 = vperm.xlu0 %1109, %v83_v44  }
  0x3b   :  { %325 = vmatmul.f32.gmra.mxu2 %v39_v42  ;;  %346 = vmatmul.f32.gmra.mxu3 %v46_v43 }
  0x3c   :  { %122 = vperm.xlu1 %1110, %v68_v45  }
  0x3e   :  { %192 = vperm.xlu2 %1111, %v82_v46  }
  0x41   :  { %280 = vmatmul.f32.gmra.mxu0 %v24_v47 }
  0x42   :  { %304 = vmatmul.f32.gmra.mxu1 %v32_v48  ;;  %117 = vperm.xlu0 %1109, %v67_v52  }
  0x43   :  { %328 = vmatmul.f32.gmra.mxu2 %v40_v49  ;;  %349 = vmatmul.f32.gmra.mxu3 %v47_v50 }
  0x44   :  { %187 = vperm.xlu1 %1110, %v81_v51  }
  0x46   :  { %112 = vperm.xlu2 %1111, %v66_v53  }
  0x49   :  { %283 = vmatmul.f32.gmra.mxu0 %v25_v54 }
  0x4a   :  { %307 = vmatmul.f32.gmra.mxu1 %v33_v55  ;;  %182 = vperm.xlu0 %1109, %v80_v58  }
  0x4b   :  { %331 = vmatmul.f32.gmra.mxu2 %v41_v56  ;;  %352 = vmatmul.f32.gmra.mxu3 %v48_v57 }
  0x4c   :  { %107 = vperm.xlu1 %1110, %v65_v59  }
  0x4e   :  { %177 = vperm.xlu2 %1111, %v79_v60  }
  0x51   :  { %286 = vmatmul.f32.gmra.mxu0 %v26_v61 }
  0x52   :  { %310 = vmatmul.f32.gmra.mxu1 %v34_v62  ;;  %102 = vperm.xlu0 %1109, %v64_v1  }
  0x53   :  { %334 = vmatmul.f32.gmra.mxu2 %v42_v63  ;;  %355 = vmatmul.f32.gmra.mxu3 %v49_v0 }
  0x54   :  { %97 = vperm.xlu1 %1110, %v63_v2  }
  0x59   :  { %289 = vmatmul.f32.gmra.mxu0 %v27_v3 }
  0x5a   :  { %313 = vmatmul.f32.gmra.mxu1 %v35_v4 }
  0x5b   :  { %337 = vmatmul.f32.gmra.mxu2 %v43_v5  ;;  %358 = vmatmul.f32.gmra.mxu3 %v50_v6 }
  0x60   :  { %v1494_v10 = vpop.permute.xlu2 %167 }
  0x61   :  { %292 = vmatmul.f32.gmra.mxu0 %v28_v7 }
  0x62   :  { %316 = vmatmul.f32.gmra.mxu1 %v36_v8 }
  0x63   :  { %361 = vmatmul.f32.gmra.mxu3 %v51_v9 }
  0x68   :  { %v1499_v12 = vpop.permute.xlu2 %237 }
  0x6b   :  { %364 = vmatmul.f32.gmra.mxu3 %v52_v11 }
  0x70   :  { %v1501_v13 = vpop.permute.xlu2 %157 }
  0x74   :  { %v1503_v14 = vpop.permute.xlu0 %252 }
  0x75   :  { %v1505_v15 = vpop.permute.xlu1 %172 }
  0x78   :  { %v1507_v16 = vpop.permute.xlu2 %222 }
  0x7c   :  { %v1509_v17 = vpop.permute.xlu0 %247 }
  0x7d   :  { %v1511_v18 = vpop.permute.xlu1 %242 }
  0x80   :  { %v143_v19 = vpop.permute.xlu2 %142 }
  0x84   :  { %v1515_v21 = vpop.permute.xlu0 %162 }
  0x85   :  { %v1513_v20 = vpop.permute.xlu1 %232 }
  0x88   :  { %v1517_v22 = vpop.permute.xlu2 %207 }
  0x8c   :  { %v1519_v23 = vpop.permute.xlu0 %227 }
  0x8d   :  { %v1521_v24 = vpop.permute.xlu1 %152 }
  0x90   :  { %v1523_v25 = vpop.permute.xlu2 %127 }
  0x94   :  { %v148_v27 = vpop.permute.xlu0 %147 }
  0x95   :  { %v218_v26 = vpop.permute.xlu1 %217 }
  0x98   :  { %v1525_v28 = vpop.permute.xlu2 %192 }
  0x9c   :  { %v213_v29 = vpop.permute.xlu0 %212 }
  0x9e   :  { %v138_v30 = vpop.permute.xlu1 %137 }
  0xa0   :  { %v113_v31 = vpop.permute.xlu2 %112 }
  0xa4   :  { %v1529_v33 = vpop.permute.xlu0 %132 }
  0xa6   :  { %v1527_v32 = vpop.permute.xlu1 %202  ;;  %v1531_v34 = vpop.f32.mrf.mxu0 }
  0xa7   :  { %v296_v35 = vpop.f32.mrf.mxu1 }
  0xa8   :  { %v297_v36 = vadd.f32 %v296_v35, %v138_v30  ;;  %v178_v37 = vpop.permute.xlu2 %177 }
  0xaa   :  { %v1053_v38 = vmul.f32 -1.442695, %v297_v36 }
  0xac   :  { %v1533_v39 = vpop.permute.xlu0 %197  ;;  %1112 = vpow2.f32 %v1053_v38 }
  0xae   :  { %v1535_v40 = vpop.permute.xlu1 %122  ;;  %v320_v41 = vpop.f32.mrf.mxu2 }
  0xaf   :  { %v341_v42 = vpop.f32.mrf.mxu3  ;;  %v275_v44 = vpop.f32.mrf.mxu0  ;;  %v321_v48 = vadd.f32 %v320_v41, %v178_v37 }
  0xb0   :  { %v342_v43 = vadd.f32 %v341_v42, %v213_v29  ;;  %v299_v45 = vpop.f32.mrf.mxu1 }
  0xb1   :  { %v300_v46 = vadd.f32 %v299_v45, %v143_v19  ;;  %v1061_v52 = vmul.f32 -1.442695, %v321_v48 }
  0xb2   :  { %v1068_v47 = vmul.f32 -1.442695, %v342_v43  ;;  %v1113_v55 = vpop.eup %1112 }
  0xb3   :  { %v1054_v49 = vmul.f32 -1.442695, %v300_v46  ;;  %v1539_v62 = vadd.f32 1.0, %v1113_v55 }
  0xb4   :  { %1114 = vpow2.f32 %v1068_v47  ;;  %v1537_v51 = vpop.permute.xlu0 %117 }
  0xb5   :  { %1116 = vpow2.f32 %v1054_v49  ;;  %vm621_vm0 = vweird.f32 %v1539_v62 }
  0xb6   :  { %v188_v50 = vpop.permute.xlu1 %187  ;;  %v323_v53 = vpop.f32.mrf.mxu2  ;;  %1118 = vpow2.f32 %v1061_v52 }
  0xb7   :  { %v344_v54 = vpop.f32.mrf.mxu3  ;;  %v278_v57 = vpop.f32.mrf.mxu0 }
  0xb8   :  { %v345_v56 = vadd.f32 %v344_v54, %v218_v26  ;;  %v302_v58 = vpop.f32.mrf.mxu1 }
  0xb9   :  { %v303_v59 = vadd.f32 %v302_v58, %v148_v27 }
  0xba   :  { %v1069_v60 = vmul.f32 -1.442695, %v345_v56  ;;  %v1115_v61 = vpop.eup %1114 }
  0xbb   :  { %v1055_v63 = vmul.f32 -1.442695, %v303_v59  ;;  %v1117_v0 = vpop.eup %1116  ;;  %v1541_v1 = vadd.f32 1.0, %v1115_v61 }
  0xbc   :  { %1120 = vpow2.f32 %v1069_v60  ;;  %v183_v2 = vpop.permute.xlu0 %182  ;;  %v1119_v8 = vpop.eup %1118  ;;  %v1545_v27 = vadd.f32 1.0, %v1117_v0 }
  0xbd   :  { %2447 = vst [vmem:[#allocation3_spill] sm:$0xff] %v1541_v1  ;;  %1122 = vrcp.f32 %v1539_v62  ;;  %v324_v4 = vadd.f32 %v323_v53, %v183_v2  ;;  %v1549_v38 = vadd.f32 1.0, %v1119_v8 }
  0xbe   :  { %v108_v3 = vpop.permute.xlu1 %107  ;;  %v326_v6 = vpop.f32.mrf.mxu2  ;;  %1124 = vpow2.f32 %v1055_v63  ;;  %vm636_vm3 = vweird.f32 %v1545_v27 }
  0xbf   :  { %v279_v5 = vadd.f32 %v278_v57, %v108_v3  ;;  %v347_v7 = vpop.f32.mrf.mxu3  ;;  %v327_v9 = vadd.f32 %v326_v6, %v188_v50  ;;  %v281_v19 = vpop.f32.mrf.mxu0  ;;  %v1062_v29 = vmul.f32 -1.442695, %v324_v4  ;;  %1126 = vrcp.f32 %v1541_v1  ;;  %2448 = vst [vmem:[#allocation4_spill] sm:$0xff] %v1549_v38 }
  0xc0   :  { %v348_v11 = vadd.f32 %v347_v7, %v1507_v16  ;;  %v305_v26 = vpop.f32.mrf.mxu1  ;;  %v282_v37 = vadd.f32 %v281_v19, %v113_v31 }
  0xc1   :  { %v1047_v30 = vmul.f32 -1.442695, %v279_v5  ;;  %v306_v35 = vadd.f32 %v305_v26, %v1521_v24  ;;  %v1063_v36 = vmul.f32 -1.442695, %v327_v9  ;;  %1128 = vpow2.f32 %v1062_v29 }
  0xc2   :  { %v1121_v41 = vpop.eup %1120  ;;  %v1070_v42 = vmul.f32 -1.442695, %v348_v11  ;;  %v1048_v46 = vmul.f32 -1.442695, %v282_v37  ;;  %v627_v26 = vand.u32 2147483648, %v1539_v62 }
  0xc3   :  { %1130 = vpow2.f32 %v1047_v30  ;;  %v1551_v43 = vpop.eup %1122  ;;  %v1056_v16 = vmul.f32 -1.442695, %v306_v35  ;;  %v1554_v48 = vadd.f32 1.0, %v1121_v41 }
  0xc4   :  { %1132 = vrcp.f32 %v1545_v27  ;;  %v1125_v45 = vpop.eup %1124  ;;  %v103_v47 = vpop.permute.xlu0 %102  ;;  %v617_v2 = vmul.f32 %v1551_v43, %v1539_v62  ;;  %vm622_vm1 = vweird.f32 %v1551_v43 }
  0xc5   :  { %1134 = vpow2.f32 %v1063_v36  ;;  %v276_v49 = vadd.f32 %v275_v44, %v103_v47  ;;  %v1558_v53 = vpop.eup %1126  ;;  %v1560_v57 = vadd.f32 1.0, %v1125_v45  ;;  %vm1641_vm5 = vmor %vm621_vm0, %vm622_vm1 }
  0xc6   :  { %v98_v24 = vpop.permute.xlu1 %97  ;;  %v329_v50 = vpop.f32.mrf.mxu2  ;;  %1136 = vrcp.f32 %v1549_v38  ;;  %2449 = vst [vmem:[#allocation5_spill] sm:$0xff] %v1558_v53  ;;  %v618_v37 = vsub.f32 1.0, %v617_v2 }
  0xc7   :  { %v273_v31 = vadd.f32 %v1531_v34, %v98_v24  ;;  %v350_v52 = vpop.f32.mrf.mxu3  ;;  %1138 = vpow2.f32 %v1070_v42  ;;  %v284_v54 = vpop.f32.mrf.mxu0  ;;  %v1046_v58 = vmul.f32 -1.442695, %v276_v49  ;;  %v330_v44 = vadd.f32 %v329_v50, %v1525_v28 }
  0xc8   :  { %v308_v55 = vpop.f32.mrf.mxu1  ;;  %v1129_v56 = vpop.eup %1128  ;;  %1140 = vpow2.f32 %v1056_v16  ;;  %v351_v28 = vadd.f32 %v350_v52, %v1519_v23  ;;  %v285_v7 = vadd.f32 %v284_v54, %v1537_v51  ;;  %v642_v24 = vand.u32 2147483648, %v1545_v27 }
  0xc9   :  { %v1131_v59 = vpop.eup %1130  ;;  %1142 = vpow2.f32 %v1048_v46  ;;  %v1045_v60 = vmul.f32 -1.442695, %v273_v31  ;;  %v1566_v61 = vadd.f32 1.0, %v1129_v56  ;;  %v1064_v6 = vmul.f32 -1.442695, %v330_v44 }
  0xca   :  { %v1563_v34 = vpop.eup %1132  ;;  %1144 = vrcp.f32 %v1554_v48  ;;  %v1568_v0 = vadd.f32 1.0, %v1131_v59  ;;  %v309_v23 = vadd.f32 %v308_v55, %v1501_v13  ;;  %v1071_v41 = vmul.f32 -1.442695, %v351_v28 }
  0xcb   :  { %2450 = vst [vmem:[#allocation6_spill] sm:$0xff] %v1566_v61  ;;  %v1135_v63 = vpop.eup %1134  ;;  %1146 = vpow2.f32 %v1046_v58  ;;  %v1049_v16 = vmul.f32 -1.442695, %v285_v7  ;;  %v625_v46 = vand.u32 2147483647, %v1539_v62  ;;  %v1599_v49 = vor.u32 1.1754944e-38, %v627_v26 }
  0xcc   :  { %v1572_v3 = vpop.eup %1136  ;;  %1148 = vrcp.f32 %v1560_v57  ;;  %v1575_v4 = vadd.f32 1.0, %v1135_v63  ;;  %v1057_v50 = vmul.f32 -1.442695, %v309_v23  ;;  %v632_v58 = vmul.f32 %v1563_v34, %v1545_v27 }
  0xcd   :  { %2451 = vst [vmem:[#allocation7_spill] sm:$0xff] %v1572_v3  ;;  %v1139_v5 = vpop.eup %1138  ;;  %1150 = vpow2.f32 %v1045_v60  ;;  %vm1622_vm2 = vcmp.eq.f32.partialorder %v625_v46, 8.507059e+37  ;;  %vm637_vm4 = vweird.f32 %v1563_v34  ;;  %vm651_vm6 = vweird.f32 %v1560_v57 }
  0xce   :  { %2452 = vst [vmem:[#allocation8_spill] sm:$0xff] %v1575_v4  ;;  %v1141_v8 = vpop.eup %1140  ;;  %1152 = vrcp.f32 %v1566_v61  ;;  %v1580_v9 = vadd.f32 1.0, %v1139_v5  ;;  %v332_v11 = vpop.f32.mrf.mxu2  ;;  %vm1707_vm11 = vmor %vm636_vm3, %vm637_vm4 }
  0xcf   :  { %v353_v19 = vpop.f32.mrf.mxu3  ;;  %v1143_v29 = vpop.eup %1142  ;;  %1154 = vrcp.f32 %v1568_v0  ;;  %v1584_v30 = vadd.f32 1.0, %v1141_v8  ;;  %v333_v45 = vadd.f32 %v332_v11, %v1533_v39  ;;  %v619_v39 = vmul.f32 %v1551_v43, %v618_v37 }
  0xd0   :  { %v287_v35 = vpop.f32.mrf.mxu0  ;;  %v311_v36 = vpop.f32.mrf.mxu1  ;;  %1156 = vrcp.f32 %v1575_v4  ;;  %v1596_v13 = vadd.f32 1.0, %v1143_v29  ;;  %v354_v44 = vadd.f32 %v353_v19, %v1513_v20  ;;  %v640_v8 = vand.u32 2147483647, %v1545_v27 }
  0xd1   :  { %v1587_v51 = vpop.eup %1144  ;;  %1158 = vpow2.f32 %v1064_v6  ;;  %v288_v52 = vadd.f32 %v287_v35, %v1535_v40  ;;  %v312_v56 = vadd.f32 %v311_v36, %v1515_v21  ;;  %v1065_v60 = vmul.f32 -1.442695, %v333_v45 }
  0xd2   :  { %2453 = vst [vmem:[#allocation9_spill] sm:$0xff] %v1587_v51  ;;  %v1147_v42 = vpop.eup %1146  ;;  %1160 = vrcp.f32 %v1580_v9  ;;  %v1627_v11 = vor.u32 1.1754944e-38, %v642_v24  ;;  %v620_v23 = vadd.f32 %v1551_v43, %v619_v39  ;;  %v1072_v36 = vmul.f32 -1.442695, %v354_v44 }
  0xd3   :  { %v1593_v47 = vpop.eup %1148  ;;  %1162 = vrcp.f32 %v1584_v30  ;;  %v1606_v55 = vadd.f32 1.0, %v1147_v42  ;;  %v1050_v20 = vmul.f32 -1.442695, %v288_v52  ;;  %v1058_v26 = vmul.f32 -1.442695, %v312_v56 }
  0xd4   :  { %v1151_v31 = vpop.eup %1150  ;;  %1164 = vpow2.f32 %v1071_v41  ;;  %v647_v40 = vmul.f32 %v1593_v47, %v1560_v57  ;;  %v633_v41 = vsub.f32 1.0, %v632_v58  ;;  %v655_v24 = vand.u32 2147483647, %v1560_v57 }
  0xd5   :  { %v1604_v54 = vpop.eup %1152  ;;  %1166 = vpow2.f32 %v1049_v16  ;;  %v1619_v2 = vadd.f32 1.0, %v1151_v31  ;;  %v657_v52 = vand.u32 2147483648, %v1560_v57  ;;  %vm652_vm7 = vweird.f32 %v1593_v47 }
  0xd6   :  { %2454 = vst [vmem:[#allocation10_spill] sm:$0xff] %v1604_v54  ;;  %v1611_v59 = vpop.eup %1154  ;;  %1168 = vrcp.f32 %v1596_v13  ;;  %v335_v28 = vpop.f32.mrf.mxu2  ;;  %v648_v37 = vsub.f32 1.0, %v647_v40  ;;  %v634_v44 = vmul.f32 %v1563_v34, %v633_v41  ;;  %vm1673_vm8 = vcmp.eq.f32.partialorder %v640_v8, 8.507059e+37  ;;  %vm1728_vm12 = vmor %vm651_vm6, %vm652_vm7 }
  0xd7   :  { %v1616_v63 = vpop.eup %1156  ;;  %2456 = vst [vmem:[#allocation12_spill] sm:$0xff] %v1619_v2  ;;  %v356_v21 = vpop.f32.mrf.mxu3  ;;  %1170 = vpow2.f32 %v1057_v50  ;;  %v336_v46 = vadd.f32 %v335_v28, %v1527_v32  ;;  %v624_v32 = vsel %vm1641_vm5, %v1551_v43, %v620_v23  ;;  %v658_v41 = vor.u32 1.1754944e-38, %v657_v52 }
  0xd8   :  { %2455 = vst [vmem:[#allocation11_spill] sm:$0xff] %v1616_v63  ;;  %v1159_v6 = vpop.eup %1158  ;;  %v290_v7 = vpop.f32.mrf.mxu0  ;;  %1172 = vrcp.f32 %v1606_v55  ;;  %v357_v62 = vadd.f32 %v356_v21, %v1499_v12  ;;  %v649_v12 = vmul.f32 %v1593_v47, %v648_v37  ;;  %vm1684_vm9 = vcmp.eq.f32.partialorder %v655_v24, 8.507059e+37 }
  0xd9   :  { %v1629_v19 = vpop.eup %1160  ;;  %v314_v29 = vpop.f32.mrf.mxu1  ;;  %1174 = vpow2.f32 %v1065_v60  ;;  %v1646_v45 = vadd.f32 1.0, %v1159_v6  ;;  %v1066_v21 = vmul.f32 -1.442695, %v336_v46  ;;  %v291_v6 = vadd.f32 %v290_v7, %v1523_v25 }
  0xda   :  { %v1635_v35 = vpop.eup %1162  ;;  %1176 = vrcp.f32 %v1619_v2  ;;  %v315_v37 = vadd.f32 %v314_v29, %v1494_v10  ;;  %v1691_v8 = vsel %vm1622_vm2, %v1599_v49, %v624_v32  ;;  %vm666_vm10 = vweird.f32 %v1584_v30 }
  0xdb   :  { %v1165_v16 = vpop.eup %1164  ;;  %2461 = vst [vmem:[#allocation13_spill] sm:$0xff] %v1646_v45  ;;  %1178 = vpow2.f32 %v1050_v20  ;;  %v662_v56 = vmul.f32 %v1635_v35, %v1584_v30  ;;  %v1051_v24 = vmul.f32 -1.442695, %v291_v6  ;;  %v650_v5 = vadd.f32 %v1593_v47, %v649_v12 }
  0xdc   :  { %v1167_v31 = vpop.eup %1166  ;;  %v1651_v50 = vadd.f32 1.0, %v1165_v16  ;;  %1180 = vpow2.f32 %v1058_v26  ;;  %v635_v49 = vadd.f32 %v1563_v34, %v634_v44  ;;  %vm667_vm13 = vweird.f32 %v1635_v35 }
  0xdd   :  { %v1655_v39 = vpop.eup %1168  ;;  %v1663_v60 = vadd.f32 1.0, %v1167_v31  ;;  %1182 = vpow2.f32 %v1072_v36  ;;  %v1073_v36 = vmul.f32 -1.442695, %v357_v62  ;;  %v663_v25 = vsub.f32 1.0, %v662_v56  ;;  %vm1777_vm15 = vmor %vm666_vm10, %vm667_vm13 }
  0xde   :  { %v1171_v58 = vpop.eup %1170  ;;  %1184 = vrcp.f32 %v1646_v45  ;;  %v338_v20 = vpop.f32.mrf.mxu2  ;;  %v670_v31 = vand.u32 2147483647, %v1584_v30  ;;  %v672_v62 = vand.u32 2147483648, %v1584_v30 }
  0xdf   :  { %v1667_v40 = vpop.eup %1172  ;;  %v1670_v28 = vadd.f32 1.0, %v1171_v58  ;;  %v359_v26 = vpop.f32.mrf.mxu3  ;;  %1186 = vrcp.f32 %v1651_v50  ;;  %v339_v10 = vadd.f32 %v338_v20, %v1517_v22  ;;  %v1059_v22 = vmul.f32 -1.442695, %v315_v37 }
  0xe0   :  { %v1175_v23 = vpop.eup %1174  ;;  %v293_v29 = vpop.f32.mrf.mxu0  ;;  %v360_v20 = vadd.f32 %v359_v26, %v1511_v18  ;;  %v1722_v26 = vor.u32 1.1754944e-38, %v672_v62  ;;  %vm1746_vm14 = vcmp.eq.f32.partialorder %v670_v31, 8.507059e+37 }
  0xe1   :  { %v1679_v42 = vpop.eup %1176  ;;  %1188 = vrcp.f32 %v1670_v28  ;;  %v1682_v16 = vadd.f32 1.0, %v1175_v23  ;;  %v317_v56 = vpop.f32.mrf.mxu1  ;;  %v294_v44 = vadd.f32 %v293_v29, %v1529_v33  ;;  %v664_v23 = vmul.f32 %v1635_v35, %v663_v25 }
  0xe2   :  { %2464 = vst [vmem:[#allocation14_spill] sm:$0xff] %v1679_v42  ;;  %v1179_v46 = vpop.eup %1178  ;;  %1190 = vrcp.f32 %v1663_v60  ;;  %v1067_v18 = vmul.f32 -1.442695, %v339_v10  ;;  %v318_v27 = vadd.f32 %v317_v56, %v1505_v15  ;;  %v654_v15 = vsel %vm1728_vm12, %v1593_v47, %v650_v5 }
  0xe3   :  { %2465 = vst [vmem:[#allocation15_spill] sm:$0xff] %v1682_v16  ;;  %v1181_v52 = vpop.eup %1180  ;;  %1192 = vpow2.f32 %v1066_v21  ;;  %v1714_v12 = vadd.f32 1.0, %v1179_v46  ;;  %v639_v10 = vsel %vm1707_vm11, %v1563_v34, %v635_v49  ;;  %v1074_v57 = vmul.f32 -1.442695, %v360_v20 }
  0xe4   :  { %v1183_v32 = vpop.eup %1182  ;;  %v1700_v58 = vadd.f32 1.0, %v1181_v52  ;;  %1194 = vpow2.f32 %v1073_v36  ;;  %v1052_v47 = vmul.f32 -1.442695, %v294_v44  ;;  %v665_v34 = vadd.f32 %v1635_v35, %v664_v23 }
  0xe5   :  { %v1711_v6 = vpop.eup %1184  ;;  %1196 = vrcp.f32 %v1682_v16  ;;  %v1734_v25 = vadd.f32 1.0, %v1183_v32  ;;  %v1060_v49 = vmul.f32 -1.442695, %v318_v27  ;;  %v1761_v31 = vsel %vm1673_vm8, %v1627_v11, %v639_v10 }
  0xe6   :  { %2470 = vst [vmem:[#allocation16_spill] sm:$0xff] %v1711_v6  ;;  %v1718_v36 = vpop.eup %1186  ;;  %1198 = vrcp.f32 %v1700_v58  ;;  %v685_v21 = vand.u32 2147483647, %v1670_v28  ;;  %v687_v7 = vand.u32 2147483648, %v1670_v28  ;;  %vm681_vm0 = vweird.f32 %v1670_v28 }
  0xe7   :  { %v1732_v33 = vpop.eup %1188  ;;  %1200 = vpow2.f32 %v1051_v24  ;;  %v362_v46 = vpop.f32.mrf.mxu3  ;;  %v669_v27 = vsel %vm1777_vm15, %v1635_v35, %v665_v34  ;;  %vm696_vm1 = vweird.f32 %v1700_v58  ;;  %v700_v30 = vand.u32 2147483647, %v1700_v58 }
  0xe8   :  { %v1742_v29 = vpop.eup %1190  ;;  %1202 = vpow2.f32 %v1059_v22  ;;  %v363_v62 = vadd.f32 %v362_v46, %v1509_v17  ;;  %v677_v56 = vmul.f32 %v1732_v33, %v1670_v28  ;;  %v1756_v17 = vsel %vm1684_vm9, %v658_v41, %v654_v15 }
  0xe9   :  { %v1193_v24 = vpop.eup %1192  ;;  %1204 = vrcp.f32 %v1714_v12  ;;  %v702_v41 = vand.u32 2147483648, %v1700_v58  ;;  %vm1800_vm2 = vcmp.eq.f32.partialorder %v685_v21, 8.507059e+37  ;;  %vm682_vm3 = vweird.f32 %v1732_v33 }
  0xea   :  { %v1195_v5 = vpop.eup %1194  ;;  %1206 = vpow2.f32 %v1067_v18  ;;  %v1075_v22 = vmul.f32 -1.442695, %v363_v62  ;;  %v678_v20 = vsub.f32 1.0, %v677_v56  ;;  %v1769_v23 = vadd.f32 1.0, %v1193_v24  ;;  %vm1843_vm6 = vmor %vm681_vm0, %vm682_vm3 }
  0xeb   :  { %v1763_v32 = vpop.eup %1196  ;;  %1208 = vrcp.f32 %v1734_v25  ;;  %v1787_v46 = vadd.f32 1.0, %v1195_v5  ;;  %v703_v34 = vor.u32 1.1754944e-38, %v702_v41  ;;  %vm1817_vm4 = vcmp.eq.f32.partialorder %v700_v30, 8.507059e+37 }
  0xec   :  { %2475 = vst [vmem:[#allocation17_spill] sm:$0xff] %v1763_v32  ;;  %v1767_v44 = vpop.eup %1198  ;;  %1210 = vpow2.f32 %v1074_v57  ;;  %v679_v15 = vmul.f32 %v1732_v33, %v678_v20 }
  0xed   :  { %2476 = vst [vmem:[#allocation18_spill] sm:$0xff] %v1769_v23  ;;  %v1201_v43 = vpop.eup %1200  ;;  %1212 = vpow2.f32 %v1052_v47  ;;  %v692_v18 = vmul.f32 %v1767_v44, %v1700_v58  ;;  %vm697_vm5 = vweird.f32 %v1767_v44  ;;  %v925_v42 = vand.u32 2147483647, %v1787_v46 }
  0xee   :  { %v1203_v37 = vpop.eup %1202  ;;  %1214 = vpow2.f32 %v1060_v49  ;;  %v1794_v57 = vadd.f32 1.0, %v1201_v43  ;;  %v688_v49 = vor.u32 1.1754944e-38, %v687_v7  ;;  %v680_v43 = vadd.f32 %v1732_v33, %v679_v15  ;;  %vm1861_vm7 = vmor %vm696_vm1, %vm697_vm5 }
  0xef   :  { %v1792_v10 = vpop.eup %1204  ;;  %v1796_v62 = vadd.f32 1.0, %v1203_v37  ;;  %1216 = vpow2.f32 %v1075_v22  ;;  %v365_v24 = vpop.f32.mrf.mxu3  ;;  %v693_v47 = vsub.f32 1.0, %v692_v18  ;;  %v1813_v22 = vsel %vm1746_vm14, %v1722_v26, %v669_v27 }
  0xf0   :  { %v1207_v35 = vpop.eup %1206  ;;  %1218 = vrcp.f32 %v1769_v23  ;;  %v366_v56 = vadd.f32 %v365_v24, %v1503_v14  ;;  %v1825_v52 = vmul.f32 %v1792_v10, %v1714_v12  ;;  %v582_v27 = vand.u32 2147483648, %v1714_v12 }
  0xf1   :  { %v1804_v20 = vpop.eup %1208  ;;  %1220 = vrcp.f32 %v1796_v62  ;;  %v1807_v11 = vadd.f32 1.0, %v1207_v35  ;;  %v694_v41 = vmul.f32 %v1767_v44, %v693_v47  ;;  %vm711_vm8 = vweird.f32 %v1796_v62 }
  0xf2   :  { %v1211_v14 = vpop.eup %1210  ;;  %1222 = vrcp.f32 %v1787_v46  ;;  %v1076_v21 = vmul.f32 -1.442695, %v366_v56  ;;  %v717_v56 = vand.u32 2147483648, %v1796_v62  ;;  %v1867_v38 = vor.u32 1.1754944e-38, %v582_v27 }
  0xf3   :  { %2481 = vst [vmem:[#allocation19_spill] sm:$0xff] %v1807_v11  ;;  %v1213_v18 = vpop.eup %1212  ;;  %1224 = vrcp.f32 %v1794_v57  ;;  %v695_v30 = vadd.f32 %v1767_v44, %v694_v41  ;;  %v1834_v47 = vadd.f32 1.0, %v1211_v14  ;;  %v715_v14 = vand.u32 2147483647, %v1796_v62 }
  0xf4   :  { %v1215_v37 = vpop.eup %1214  ;;  %v1829_v24 = vadd.f32 1.0, %v1213_v18  ;;  %1226 = vpow2.f32 %v1076_v21  ;;  %v718_v27 = vor.u32 1.1754944e-38, %v717_v56  ;;  %vm591_vm15 = vweird.f32 %v1794_v57 }
  0xf5   :  { %v1217_v15 = vpop.eup %1216  ;;  %1228 = vrcp.f32 %v1807_v11  ;;  %v1836_v35 = vadd.f32 1.0, %v1215_v37  ;;  %v684_v37 = vsel %vm1843_vm6, %v1732_v33, %v680_v43  ;;  %v699_v58 = vsel %vm1861_vm7, %v1767_v44, %v695_v30 }
  0xf6   :  { %v1847_v21 = vpop.eup %1218  ;;  %1230 = vrcp.f32 %v1829_v24  ;;  %v1850_v41 = vadd.f32 1.0, %v1217_v15  ;;  %v1884_v15 = vsel %vm1800_vm2, %v688_v49, %v684_v37  ;;  %vm1887_vm9 = vcmp.eq.f32.partialorder %v715_v14, 8.507059e+37 }
  0xf7   :  { %2486 = vst [vmem:[#allocation20_spill] sm:$0xff] %v1847_v21  ;;  %v1856_v26 = vpop.eup %1220  ;;  %1232 = vrcp.f32 %v1836_v35  ;;  %v732_v33 = vand.u32 2147483648, %v1836_v35  ;;  %v730_v61 = vand.u32 2147483647, %v1836_v35  ;;  %v612_v44 = vand.u32 2147483648, %v1829_v24 }
  0xf8   :  { %v1869_v54 = vpop.eup %1222  ;;  %1234 = vrcp.f32 %v1850_v41  ;;  %v707_v43 = vmul.f32 %v1856_v26, %v1796_v62  ;;  %v597_v30 = vand.u32 2147483648, %v1794_v57  ;;  %vm726_vm10 = vweird.f32 %v1836_v35 }
  0xf9   :  { %v1878_v18 = vpop.eup %1224  ;;  %1236 = vrcp.f32 %v1834_v47  ;;  %vm712_vm11 = vweird.f32 %v1856_v26  ;;  %v1901_v5 = vsel %vm1817_vm4, %v703_v34, %v699_v58  ;;  %v957_v49 = vand.u32 2147483648, %v1850_v41 }
  0xfa   :  { %v1227_v3 = vpop.eup %1226  ;;  %v708_v63 = vsub.f32 1.0, %v707_v43  ;;  %v1906_v14 = vor.u32 1.1754944e-38, %v732_v33  ;;  %vm606_vm12 = vweird.f32 %v1829_v24  ;;  %v955_v43 = vand.u32 2147483647, %v1850_v41  ;;  %vm1934_vm0 = vmor %vm711_vm8, %vm712_vm11 }
  0xfb   :  { %v1893_v28 = vpop.eup %1228  ;;  %v1895_v6 = vadd.f32 1.0, %v1227_v3  ;;  %v610_v3 = vand.u32 2147483647, %v1829_v24  ;;  %vm951_vm13 = vweird.f32 %v1850_v41  ;;  %v587_v7 = vmul.f32 %v1878_v18, %v1794_v57 }
  0xfc   :  { %2491 = vst [vmem:[#allocation21_spill] sm:$0xff] %v1893_v28  ;;  %v1904_v56 = vpop.eup %1230  ;;  %v709_v37 = vmul.f32 %v1856_v26, %v708_v63  ;;  %vm1920_vm14 = vcmp.eq.f32.partialorder %v730_v61, 8.507059e+37  ;;  %v613_v21 = vor.u32 1.1754944e-38, %v612_v44  ;;  %v958_v11 = vor.u32 1.1754944e-38, %v957_v49 }
  0xfd   :  { %v1233_v45 = vpop.eup %1232  ;;  %1238 = vrcp.f32 %v1895_v6  ;;  %v972_v34 = vand.u32 2147483648, %v1895_v6  ;;  %v602_v16 = vmul.f32 %v1904_v56, %v1829_v24  ;;  %v970_v61 = vand.u32 2147483647, %v1895_v6 }
  0xfe   :  { %v1917_v33 = vpop.eup %1234  ;;  %v722_v63 = vmul.f32 %v1233_v45, %v1836_v35  ;;  %v710_v32 = vadd.f32 %v1856_v26, %v709_v37  ;;  %vm592_vm1 = vweird.f32 %v1878_v18  ;;  %vm727_vm2 = vweird.f32 %v1233_v45 }
  0xff   :  { %v1928_v23 = vpop.eup %1236  ;;  %v947_v37 = vmul.f32 %v1917_v33, %v1850_v41  ;;  %v603_v1 = vsub.f32 1.0, %v602_v16  ;;  %vm1945_vm3 = vcmp.eq.f32.partialorder %v610_v3, 8.507059e+37  ;;  %vm1949_vm4 = vcmp.eq.f32.partialorder %v955_v43, 8.507059e+37  ;;  %vm1977_vm6 = vmor %vm726_vm10, %vm727_vm2 }
 0x100   :  { %v723_v44 = vsub.f32 1.0, %v722_v63  ;;  %v714_v53 = vsel %vm1934_vm0, %v1856_v26, %v710_v32  ;;  %v1953_v2 = vor.u32 1.1754944e-38, %v972_v34  ;;  %vm607_vm5 = vweird.f32 %v1904_v56 }
 0x101   :  { %v948_v49 = vsub.f32 1.0, %v947_v37  ;;  %v588_v63 = vsub.f32 1.0, %v587_v7  ;;  %v604_v16 = vmul.f32 %v1904_v56, %v603_v1  ;;  %vm952_vm8 = vweird.f32 %v1917_v33 }
 0x102   :  { %v724_v51 = vmul.f32 %v1233_v45, %v723_v44  ;;  %v2500_v32 = vand.u32 2147483647, %v1794_v57  ;;  %v932_v28 = vmul.f32 %v1928_v23, %v1834_v47  ;;  %v719_v43 = vsel %vm1887_vm9, %v718_v27, %v714_v53  ;;  %vm1991_vm9 = vmor %vm606_vm12, %vm607_vm5 }
 0x103   :  { %v1239_v3 = vpop.eup %1238  ;;  %v949_v34 = vmul.f32 %v1917_v33, %v948_v49  ;;  %v589_v7 = vmul.f32 %v1878_v18, %v588_v63  ;;  %v940_v1 = vand.u32 2147483647, %v1834_v47  ;;  %vm576_vm0 = vweird.f32 %v1714_v12  ;;  %vm2007_vm12 = vmor %vm951_vm13, %vm952_vm8 }
 0x104   :  { %vm1962_vm11 = vcmp.eq.f32.partialorder %v2500_v32, 8.507059e+37  ;;  %v725_v37 = vadd.f32 %v1233_v45, %v724_v51  ;;  %v962_v32 = vmul.f32 %v1239_v3, %v1895_v6  ;;  %vm1982_vm7 = vcmp.eq.f32.partialorder %v970_v61, 8.507059e+37 }
 0x105   :  { %v605_v4 = vadd.f32 %v1904_v56, %v604_v16  ;;  %v598_v27 = vor.u32 1.1754944e-38, %v597_v30  ;;  %v950_v35 = vadd.f32 %v1917_v33, %v949_v34  ;;  %v590_v49 = vadd.f32 %v1878_v18, %v589_v7 }
 0x106   :  { %v933_v63 = vsub.f32 1.0, %v932_v28  ;;  %vm936_vm10 = vweird.f32 %v1834_v47  ;;  %v729_v61 = vsel %vm1977_vm6, %v1233_v45, %v725_v37  ;;  %v963_v16 = vsub.f32 1.0, %v962_v32  ;;  %vm2022_vm6 = vmor %vm591_vm15, %vm592_vm1 }
 0x107   :  { %v609_v30 = vsel %vm1991_vm9, %v1904_v56, %v605_v4  ;;  %vm937_vm2 = vweird.f32 %v1928_v23  ;;  %v734_v28 = vsel %vm1920_vm14, %v1906_v14, %v729_v61  ;;  %vm967_vm5 = vweird.f32 %v1239_v3  ;;  %v2547_v14 = vld [vmem:[#allocation14_spill] sm:$0xff] }
 0x108   :  { %v954_v45 = vsel %vm2007_vm12, %v1917_v33, %v950_v35  ;;  %vm2026_vm13 = vcmp.eq.f32.partialorder %v940_v1, 8.507059e+37  ;;  %v2515_v58 = vand.u32 2147483647, %v1714_v12  ;;  %vm921_vm8 = vweird.f32 %v1787_v46  ;;  %980 = vmatpush.msrb.mxu1 %v734_v28  ;;  %vm2058_vm15 = vmor %vm936_vm10, %vm937_vm2 }
 0x109   :  { %v964_v33 = vmul.f32 %v1239_v3, %v963_v16  ;;  %v594_v57 = vsel %vm2022_vm6, %v1878_v18, %v590_v49  ;;  %v934_v34 = vmul.f32 %v1928_v23, %v933_v63  ;;  %v942_v7 = vand.u32 2147483648, %v1834_v47 }
 0x10a   :  { %vm2032_vm14 = vcmp.eq.f32.partialorder %v2515_v58, 8.507059e+37  ;;  %v2044_v1 = vsel %vm1945_vm3, %v613_v21, %v609_v30  ;;  %v959_v37 = vsel %vm1949_vm4, %v958_v11, %v954_v45  ;;  %v2518_v44 = vsub.f32 1.0, %v1825_v52  ;;  %981 = vmatpush.msrb.mxu1 %v719_v43 }
 0x10b   :  { %v917_v4 = vmul.f32 %v1869_v54, %v1787_v46  ;;  %v965_v18 = vadd.f32 %v1239_v3, %v964_v33  ;;  %v935_v51 = vadd.f32 %v1928_v23, %v934_v34  ;;  %v927_v11 = vand.u32 2147483648, %v1787_v46 }
 0x10c   :  { %v574_v32 = vmul.f32 %v1792_v10, %v2518_v44  ;;  %vm2521_vm1 = vweird.f32 %v1895_v6  ;;  %v2069_v52 = vsel %vm1962_vm11, %v598_v27, %v594_v57  ;;  %v557_v47 = vmul.f32 %v1742_v29, %v1663_v60  ;;  %982 = vmatpush.msrb.mxu1 %v1901_v5 }
 0x10d   :  { %vm968_vm3 = vmor %vm2521_vm1, %vm967_vm5  ;;  %v918_v43 = vsub.f32 1.0, %v917_v4  ;;  %v939_v49 = vsel %vm2058_vm15, %v1928_v23, %v935_v51  ;;  %v943_v63 = vor.u32 1.1754944e-38, %v942_v7  ;;  %vm2522_vm4 = vweird.f32 %v1792_v10 }
 0x10e   :  { %v575_v62 = vadd.f32 %v1792_v10, %v574_v32  ;;  %v969_v35 = vsel %vm968_vm3, %v1239_v3, %v965_v18  ;;  %vm2082_vm11 = vmor %vm576_vm0, %vm2522_vm4  ;;  %vm922_vm9 = vweird.f32 %v1869_v54  ;;  %vm561_vm10 = vweird.f32 %v1663_v60  ;;  %983 = vmatpush.msrb.mxu1 %v1884_v15 }
 0x10f   :  { %v974_v5 = vsel %vm1982_vm7, %v1953_v2, %v969_v35  ;;  %v919_v23 = vmul.f32 %v1869_v54, %v918_v43  ;;  %vm2096_vm0 = vcmp.eq.f32.partialorder %v925_v42, 8.507059e+37  ;;  %v928_v3 = vor.u32 1.1754944e-38, %v927_v11  ;;  %vm923_vm7 = vmor %vm921_vm8, %vm922_vm9 }
 0x110   :  { %v579_v26 = vsel %vm2082_vm11, %v1792_v10, %v575_v62  ;;  %1000 = vmatpush.msrb.mxu2 %v974_v5  ;;  %v558_v27 = vsub.f32 1.0, %v557_v47  ;;  %v565_v53 = vand.u32 2147483647, %v1663_v60  ;;  %v944_v2 = vsel %vm2026_vm13, %v943_v63, %v939_v49  ;;  %984 = vmatpush.msrb.mxu1 %v1813_v22 }
 0x111   :  { %v920_v10 = vadd.f32 %v1869_v54, %v919_v23  ;;  %v567_v61 = vand.u32 2147483648, %v1663_v60  ;;  %v902_v16 = vmul.f32 %v1804_v20, %v1734_v25  ;;  %v584_v15 = vsel %vm2032_vm14, %v1867_v38, %v579_v26  ;;  %v2558_v26 = vld [vmem:[#allocation18_spill] sm:$0xff] }
 0x112   :  { %1001 = vmatpush.msrb.mxu2 %v959_v37  ;;  %v559_v30 = vmul.f32 %v1742_v29, %v558_v27  ;;  %vm562_vm12 = vweird.f32 %v1742_v29  ;;  %v910_v24 = vand.u32 2147483647, %v1734_v25  ;;  %vm906_vm2 = vweird.f32 %v1734_v25  ;;  %985 = vmatpush.msrb.mxu1 %v1756_v17 }
 0x113   :  { %v924_v28 = vsel %vm923_vm7, %v1869_v54, %v920_v10  ;;  %v903_v45 = vsub.f32 1.0, %v902_v16  ;;  %v912_v22 = vand.u32 2147483648, %v1734_v25  ;;  %vm2123_vm5 = vcmp.eq.f32.partialorder %v565_v53, 8.507059e+37  ;;  %vm2134_vm13 = vmor %vm561_vm10, %vm562_vm12 }
 0x114   :  { %1002 = vmatpush.msrb.mxu2 %v944_v2  ;;  %v560_v38 = vadd.f32 %v1742_v29, %v559_v30  ;;  %vm907_vm6 = vweird.f32 %v1804_v20  ;;  %v542_v41 = vmul.f32 %v1655_v39, %v1596_v13  ;;  %v929_v54 = vsel %vm2096_vm0, %v928_v3, %v924_v28  ;;  %986 = vmatpush.msrb.mxu1 %v1761_v31  ;;  %v2543_v28 = vld [vmem:[#allocation9_spill] sm:$0xff] }
 0x115   :  { %v568_v17 = vor.u32 1.1754944e-38, %v567_v61  ;;  %v904_v58 = vmul.f32 %v1804_v20, %v903_v45  ;;  %vm2139_vm14 = vcmp.eq.f32.partialorder %v910_v24, 8.507059e+37  ;;  %v913_v57 = vor.u32 1.1754944e-38, %v912_v22  ;;  %vm908_vm15 = vmor %vm906_vm2, %vm907_vm6 }
 0x116   :  { %1003 = vmatpush.msrb.mxu2 %v929_v54  ;;  %v564_v33 = vsel %vm2134_vm13, %v1742_v29, %v560_v38  ;;  %v543_v60 = vsub.f32 1.0, %v542_v41  ;;  %v550_v34 = vand.u32 2147483647, %v1596_v13  ;;  %vm546_vm8 = vweird.f32 %v1596_v13  ;;  %987 = vmatpush.msrb.mxu1 %v1691_v8 }
 0x117   :  { %v905_v7 = vadd.f32 %v1804_v20, %v904_v58  ;;  %v552_v37 = vand.u32 2147483648, %v1596_v13  ;;  %v887_v44 = vmul.f32 %v1718_v36, %v1651_v50  ;;  %v569_v31 = vsel %vm2123_vm5, %v568_v17, %v564_v33  ;;  %v2546_v58 = vld [vmem:[#allocation12_spill] sm:$0xff] }
 0x118   :  { %v544_v29 = vmul.f32 %v1655_v39, %v543_v60  ;;  %vm547_vm1 = vweird.f32 %v1655_v39  ;;  %vm891_vm3 = vweird.f32 %v1651_v50  ;;  %v895_v18 = vand.u32 2147483647, %v1651_v50  ;;  %988 = vmatpush.msrb.mxu1 %v2044_v1 }
 0x119   :  { %v909_v32 = vsel %vm908_vm15, %v1804_v20, %v905_v7  ;;  %v888_v4 = vsub.f32 1.0, %v887_v44  ;;  %v897_v8 = vand.u32 2147483648, %v1651_v50  ;;  %vm2170_vm4 = vcmp.eq.f32.partialorder %v550_v34, 8.507059e+37  ;;  %vm2178_vm11 = vmor %vm546_vm8, %vm547_vm1 }
 0x11a   :  { %v914_v51 = vsel %vm2139_vm14, %v913_v57, %v909_v32  ;;  %v545_v25 = vadd.f32 %v1655_v39, %v544_v29  ;;  %v527_v42 = vmul.f32 %v1611_v59, %v1568_v0  ;;  %v553_v1 = vor.u32 1.1754944e-38, %v552_v37  ;;  %989 = vmatpush.msrb.mxu1 %v2069_v52  ;;  %v2550_v29 = vld [vmem:[#allocation3_spill] sm:$0xff]  ;;  %v2551_v32 = vld [vmem:[#allocation5_spill] sm:$0xff] }
 0x11b   :  { %1004 = vmatpush.msrb.mxu2 %v914_v51  ;;  %v889_v11 = vmul.f32 %v1718_v36, %v888_v4  ;;  %vm892_vm9 = vweird.f32 %v1718_v36  ;;  %vm531_vm10 = vweird.f32 %v1568_v0  ;;  %vm2189_vm0 = vcmp.eq.f32.partialorder %v895_v18, 8.507059e+37 }
 0x11c   :  { %v549_v62 = vsel %vm2178_vm11, %v1655_v39, %v545_v25  ;;  %v528_v13 = vsub.f32 1.0, %v527_v42  ;;  %v535_v47 = vand.u32 2147483647, %v1568_v0  ;;  %v898_v49 = vor.u32 1.1754944e-38, %v897_v8  ;;  %990 = vmatpush.msrb.mxu1 %v584_v15  ;;  %vm893_vm7 = vmor %vm891_vm3, %vm892_vm9 }
 0x11d   :  { %v890_v35 = vadd.f32 %v1718_v36, %v889_v11  ;;  %v537_v63 = vand.u32 2147483648, %v1568_v0  ;;  %v872_v6 = vmul.f32 %v1629_v19, %v1580_v9  ;;  %v554_v52 = vsel %vm2170_vm4, %v553_v1, %v549_v62  ;;  %v2554_v1 = vld [vmem:[#allocation19_spill] sm:$0xff]  ;;  %v2555_v11 = vld [vmem:[#allocation21_spill] sm:$0xff] }
 0x11e   :  { %v529_v39 = vmul.f32 %v1611_v59, %v528_v13  ;;  %vm532_vm12 = vweird.f32 %v1611_v59  ;;  %vm876_vm2 = vweird.f32 %v1580_v9  ;;  %vm2206_vm5 = vcmp.eq.f32.partialorder %v535_v47, 8.507059e+37  ;;  %991 = vmatpush.msrb.mxu1 %v569_v31 }
 0x11f   :  { %v894_v5 = vsel %vm893_vm7, %v1718_v36, %v890_v35  ;;  %v873_v23 = vsub.f32 1.0, %v872_v6  ;;  %v880_v12 = vand.u32 2147483647, %v1580_v9  ;;  %v882_v27 = vand.u32 2147483648, %v1580_v9  ;;  %vm533_vm6 = vmor %vm531_vm10, %vm532_vm12  ;;  %v976_v6 = vld [vmem:[%s2416_s3] sm:$0xff] }
 0x120   :  { %v899_v50 = vsel %vm2189_vm0, %v898_v49, %v894_v5  ;;  %v530_v3 = vadd.f32 %v1611_v59, %v529_v39  ;;  %v512_v53 = vmul.f32 %v1667_v40, %v1606_v55  ;;  %v538_v36 = vor.u32 1.1754944e-38, %v537_v63  ;;  %992 = vmatpush.msrb.mxu1 %v554_v52 }
 0x121   :  { %1005 = vmatpush.msrb.mxu2 %v899_v50  ;;  %v874_v2 = vmul.f32 %v1629_v19, %v873_v23  ;;  %vm877_vm13 = vweird.f32 %v1629_v19  ;;  %vm516_vm14 = vweird.f32 %v1606_v55  ;;  %vm2223_vm8 = vcmp.eq.f32.partialorder %v880_v12, 8.507059e+37  ;;  %v2559_v23 = vld [vmem:[#allocation20_spill] sm:$0xff] }
 0x122   :  { %v534_v10 = vsel %vm533_vm6, %v1611_v59, %v530_v3  ;;  %v513_v16 = vsub.f32 1.0, %v512_v53  ;;  %v520_v15 = vand.u32 2147483647, %v1606_v55  ;;  %v522_v24 = vand.u32 2147483648, %v1606_v55  ;;  %vm878_vm15 = vmor %vm876_vm2, %vm877_vm13 }
 0x123   :  { %v539_v0 = vsel %vm2206_vm5, %v538_v36, %v534_v10  ;;  %v875_v30 = vadd.f32 %v1629_v19, %v874_v2  ;;  %v857_v45 = vmul.f32 %v2543_v28, %v1554_v48  ;;  %v883_v59 = vor.u32 1.1754944e-38, %v882_v27 }
 0x124   :  { %993 = vmatpush.msrb.mxu1 %v539_v0  ;;  %v514_v22 = vmul.f32 %v1667_v40, %v513_v16  ;;  %vm517_vm1 = vweird.f32 %v1667_v40  ;;  %vm861_vm3 = vweird.f32 %v1554_v48  ;;  %vm2240_vm4 = vcmp.eq.f32.partialorder %v520_v15, 8.507059e+37  ;;  %v2562_v15 = vld [vmem:[#allocation15_spill] sm:$0xff]  ;;  %v2563_v0 = vld [vmem:[#allocation17_spill] sm:$0xff] }
 0x125   :  { %v879_v38 = vsel %vm878_vm15, %v1629_v19, %v875_v30  ;;  %v858_v41 = vsub.f32 1.0, %v857_v45  ;;  %v865_v54 = vand.u32 2147483647, %v1554_v48  ;;  %v867_v17 = vand.u32 2147483648, %v1554_v48  ;;  %vm518_vm11 = vmor %vm516_vm14, %vm517_vm1 }
 0x126   :  { %v884_v9 = vsel %vm2223_vm8, %v883_v59, %v879_v38  ;;  %v515_v56 = vadd.f32 %v1667_v40, %v514_v22  ;;  %v497_v33 = vmul.f32 %v2547_v14, %v2546_v58  ;;  %v523_v19 = vor.u32 1.1754944e-38, %v522_v24 }
 0x127   :  { %1006 = vmatpush.msrb.mxu2 %v884_v9  ;;  %v859_v57 = vmul.f32 %v2543_v28, %v858_v41  ;;  %vm862_vm9 = vweird.f32 %v2543_v28  ;;  %vm501_vm10 = vweird.f32 %v2546_v58  ;;  %vm2257_vm0 = vcmp.eq.f32.partialorder %v865_v54, 8.507059e+37  ;;  %v2566_v9 = vld [vmem:[#allocation13_spill] sm:$0xff] }
 0x128   :  { %v519_v60 = vsel %vm518_vm11, %v1667_v40, %v515_v56  ;;  %v498_v7 = vsub.f32 1.0, %v497_v33  ;;  %v505_v37 = vand.u32 2147483647, %v2546_v58  ;;  %v507_v31 = vand.u32 2147483648, %v2546_v58  ;;  %vm863_vm7 = vmor %vm861_vm3, %vm862_vm9  ;;  %v2567_v56 = vld [vmem:[#allocation16_spill] sm:$0xff] }
 0x129   :  { %v524_v55 = vsel %vm2240_vm4, %v523_v19, %v519_v60  ;;  %v860_v44 = vadd.f32 %v2543_v28, %v859_v57  ;;  %v842_v4 = vmul.f32 %v2551_v32, %v2550_v29  ;;  %v868_v40 = vor.u32 1.1754944e-38, %v867_v17 }
 0x12a   :  { %994 = vmatpush.msrb.mxu1 %v524_v55  ;;  %v499_v18 = vmul.f32 %v2547_v14, %v498_v7  ;;  %vm502_vm12 = vweird.f32 %v2547_v14  ;;  %vm846_vm2 = vweird.f32 %v2550_v29  ;;  %vm2274_vm5 = vcmp.eq.f32.partialorder %v505_v37, 8.507059e+37  ;;  %v2570_v55 = vld [vmem:[#allocation8_spill] sm:$0xff] }
 0x12b   :  { %v864_v8 = vsel %vm863_vm7, %v2543_v28, %v860_v44  ;;  %v843_v25 = vsub.f32 1.0, %v842_v4  ;;  %v850_v21 = vand.u32 2147483647, %v2550_v29  ;;  %v852_v20 = vand.u32 2147483648, %v2550_v29  ;;  %vm503_vm6 = vmor %vm501_vm10, %vm502_vm12  ;;  %v2571_v44 = vld [vmem:[#allocation11_spill] sm:$0xff] }
 0x12c   :  { %v869_v48 = vsel %vm2257_vm0, %v868_v40, %v864_v8  ;;  %v500_v42 = vadd.f32 %v2547_v14, %v499_v18  ;;  %v827_v62 = vmul.f32 %v2555_v11, %v2554_v1  ;;  %v508_v43 = vor.u32 1.1754944e-38, %v507_v31 }
 0x12d   :  { %1007 = vmatpush.msrb.mxu2 %v869_v48  ;;  %v844_v13 = vmul.f32 %v2551_v32, %v843_v25  ;;  %vm847_vm13 = vweird.f32 %v2551_v32  ;;  %vm831_vm14 = vweird.f32 %v2554_v1  ;;  %vm2291_vm8 = vcmp.eq.f32.partialorder %v850_v21, 8.507059e+37  ;;  %v2572_v21 = vld [vmem:[#allocation6_spill] sm:$0xff] }
 0x12e   :  { %v504_v47 = vsel %vm503_vm6, %v2547_v14, %v500_v42  ;;  %v828_v49 = vsub.f32 1.0, %v827_v62  ;;  %v835_v63 = vand.u32 2147483647, %v2554_v1  ;;  %v837_v5 = vand.u32 2147483648, %v2554_v1  ;;  %vm848_vm15 = vmor %vm846_vm2, %vm847_vm13  ;;  %v2573_v48 = vld [vmem:[#allocation10_spill] sm:$0xff] }
 0x12f   :  { %v509_v52 = vsel %vm2274_vm5, %v508_v43, %v504_v47  ;;  %v845_v39 = vadd.f32 %v2551_v32, %v844_v13  ;;  %v812_v12 = vmul.f32 %v2559_v23, %v2558_v26  ;;  %v853_v50 = vor.u32 1.1754944e-38, %v852_v20 }
 0x130   :  { %995 = vmatpush.msrb.mxu1 %v509_v52  ;;  %v829_v3 = vmul.f32 %v2555_v11, %v828_v49  ;;  %vm832_vm1 = vweird.f32 %v2555_v11  ;;  %vm816_vm3 = vweird.f32 %v2558_v26  ;;  %vm2311_vm4 = vcmp.eq.f32.partialorder %v835_v63, 8.507059e+37  ;;  %v2576_v63 = vld [vmem:[#allocation4_spill] sm:$0xff] }
 0x131   :  { %v849_v27 = vsel %vm848_vm15, %v2551_v32, %v845_v39  ;;  %v813_v36 = vsub.f32 1.0, %v812_v12  ;;  %v820_v2 = vand.u32 2147483647, %v2558_v26  ;;  %996 = vmatmul.f32.vlgmr.msrb.gmra.mxu1 %v976_v6  ;;  %v822_v16 = vand.u32 2147483648, %v2558_v26  ;;  %vm833_vm11 = vmor %vm831_vm14, %vm832_vm1  ;;  %v2577_v6 = vld [vmem:[#allocation7_spill] sm:$0xff] }
 0x132   :  { %v854_v10 = vsel %vm2291_vm8, %v853_v50, %v849_v27  ;;  %v830_v61 = vadd.f32 %v2555_v11, %v829_v3  ;;  %v797_v30 = vmul.f32 %v2563_v0, %v2562_v15  ;;  %v838_v24 = vor.u32 1.1754944e-38, %v837_v5 }
 0x133   :  { %1008 = vmatpush.msrb.mxu2 %v854_v10  ;;  %v814_v28 = vmul.f32 %v2559_v23, %v813_v36  ;;  %vm817_vm9 = vweird.f32 %v2559_v23  ;;  %vm801_vm10 = vweird.f32 %v2562_v15  ;;  %vm2328_vm0 = vcmp.eq.f32.partialorder %v820_v2, 8.507059e+37 }
 0x134   :  { %v834_v45 = vsel %vm833_vm11, %v2555_v11, %v830_v61  ;;  %v798_v22 = vsub.f32 1.0, %v797_v30  ;;  %v805_v38 = vand.u32 2147483647, %v2562_v15  ;;  %v807_v54 = vand.u32 2147483648, %v2562_v15  ;;  %vm818_vm7 = vmor %vm816_vm3, %vm817_vm9 }
 0x135   :  { %v839_v46 = vsel %vm2311_vm4, %v838_v24, %v834_v45  ;;  %v815_v41 = vadd.f32 %v2559_v23, %v814_v28  ;;  %v782_v17 = vmul.f32 %v2567_v56, %v2566_v9  ;;  %v823_v58 = vor.u32 1.1754944e-38, %v822_v16 }
 0x136   :  { %1009 = vmatpush.msrb.mxu2 %v839_v46  ;;  %v799_v14 = vmul.f32 %v2563_v0, %v798_v22  ;;  %vm802_vm12 = vweird.f32 %v2563_v0  ;;  %vm786_vm2 = vweird.f32 %v2566_v9  ;;  %vm2345_vm5 = vcmp.eq.f32.partialorder %v805_v38, 8.507059e+37 }
 0x137   :  { %v819_v33 = vsel %vm818_vm7, %v2559_v23, %v815_v41  ;;  %v783_v57 = vsub.f32 1.0, %v782_v17  ;;  %v790_v60 = vand.u32 2147483647, %v2566_v9  ;;  %v792_v37 = vand.u32 2147483648, %v2566_v9  ;;  %vm803_vm6 = vmor %vm801_vm10, %vm802_vm12 }
 0x138   :  { %v824_v34 = vsel %vm2328_vm0, %v823_v58, %v819_v33  ;;  %v800_v7 = vadd.f32 %v2563_v0, %v799_v14  ;;  %v767_v31 = vmul.f32 %v2571_v44, %v2570_v55  ;;  %v808_v29 = vor.u32 1.1754944e-38, %v807_v54 }
 0x139   :  { %1010 = vmatpush.msrb.mxu2 %v824_v34  ;;  %v784_v32 = vmul.f32 %v2567_v56, %v783_v57  ;;  %vm787_vm13 = vweird.f32 %v2567_v56  ;;  %vm771_vm14 = vweird.f32 %v2570_v55  ;;  %v775_v18 = vand.u32 2147483647, %v2570_v55 }
 0x13a   :  { %v804_v4 = vsel %vm803_vm6, %v2563_v0, %v800_v7  ;;  %v768_v40 = vsub.f32 1.0, %v767_v31  ;;  %v777_v8 = vand.u32 2147483648, %v2570_v55  ;;  %vm791_vm8 = vcmp.eq.f32.partialorder %v790_v60, 8.507059e+37  ;;  %vm788_vm15 = vmor %vm786_vm2, %vm787_vm13  ;;  %v977_v0 = vld [vmem:[%s2416_s3 + $0x8] sm:$0xff] }
 0x13b   :  { %v809_v51 = vsel %vm2345_vm5, %v808_v29, %v804_v4  ;;  %v785_v25 = vadd.f32 %v2567_v56, %v784_v32  ;;  %v752_v42 = vmul.f32 %v2573_v48, %v2572_v21  ;;  %v793_v20 = vor.u32 1.1754944e-38, %v792_v37 }
 0x13c   :  { %1011 = vmatpush.msrb.mxu2 %v809_v51  ;;  %v769_v1 = vmul.f32 %v2571_v44, %v768_v40  ;;  %vm772_vm1 = vweird.f32 %v2571_v44  ;;  %vm2373_vm3 = vcmp.eq.f32.partialorder %v775_v18, 8.507059e+37  ;;  %v778_v43 = vor.u32 1.1754944e-38, %v777_v8 }
 0x13d   :  { %v789_v62 = vsel %vm788_vm15, %v2567_v56, %v785_v25  ;;  %v753_v13 = vsub.f32 1.0, %v752_v42  ;;  %vm757_vm4 = vweird.f32 %v2573_v48  ;;  %v762_v49 = vand.u32 2147483648, %v2572_v21  ;;  %vm773_vm11 = vmor %vm771_vm14, %vm772_vm1 }
 0x13e   :  { %v794_v47 = vsel %vm791_vm8, %v793_v20, %v789_v62  ;;  %v770_v35 = vadd.f32 %v2571_v44, %v769_v1  ;;  %v737_v52 = vmul.f32 %v2577_v6, %v2576_v63  ;;  %v760_v5 = vand.u32 2147483647, %v2572_v21 }
 0x13f   :  { %1012 = vmatpush.msrb.mxu2 %v794_v47  ;;  %v754_v39 = vmul.f32 %v2573_v48, %v753_v13  ;;  %vm741_vm9 = vweird.f32 %v2576_v63  ;;  %vm742_vm10 = vweird.f32 %v2577_v6  ;;  %v745_v12 = vand.u32 2147483647, %v2576_v63 }
 0x140   :  { %v774_v26 = vsel %vm773_vm11, %v2571_v44, %v770_v35  ;;  %v738_v23 = vsub.f32 1.0, %v737_v52  ;;  %v747_v50 = vand.u32 2147483648, %v2576_v63  ;;  %vm756_vm0 = vweird.f32 %v2572_v21  ;;  %vm743_vm2 = vmor %vm741_vm9, %vm742_vm10 }
 0x141   :  { %v779_v3 = vsel %vm2373_vm3, %v778_v43, %v774_v26  ;;  %v755_v27 = vadd.f32 %v2573_v48, %v754_v39  ;;  %vm758_vm7 = vmor %vm756_vm0, %vm757_vm4  ;;  %v763_v53 = vor.u32 1.1754944e-38, %v762_v49  ;;  %vm761_vm12 = vcmp.eq.f32.partialorder %v760_v5, 8.507059e+37 }
 0x142   :  { %1013 = vmatpush.msrb.mxu2 %v779_v3  ;;  %v739_v36 = vmul.f32 %v2577_v6, %v738_v23  ;;  %v748_v10 = vor.u32 1.1754944e-38, %v747_v50  ;;  %vm746_vm5 = vcmp.eq.f32.partialorder %v745_v12, 8.507059e+37  ;;  %v979_v24 = vstv %s2417_s4 }
 0x143   :  { %v759_v2 = vsel %vm758_vm7, %v2573_v48, %v755_v27  ;;  %vm1039_vm8 = vcmask 613376  }
 0x144   :  { %v764_v61 = vsel %vm761_vm12, %v763_v53, %v759_v2  ;;  %v740_v16 = vadd.f32 %v2577_v6, %v739_v36 }
 0x145   :  { %1014 = vmatpush.msrb.mxu2 %v764_v61 }
 0x146   :  { %v744_v15 = vsel %vm743_vm2, %v2577_v6, %v740_v16 }
 0x147   :  { %v749_v30 = vsel %vm746_vm5, %v748_v10, %v744_v15 }
 0x148   :  { %1015 = vmatpush.msrb.mxu2 %v749_v30 }
 0x149   :  { %1016 = vmatmul.f32.vlgmr.msrb.gmra.mxu2 %v977_v0 }
 0x1ae   :  { %v997_v28 = vpop.f32.mrf.mxu1 }
 0x1af   :  { %v998_v45 = vadd.f32 %v997_v28, %v979_v24 }
 0x1cc   :  { %v1017_v59 = vpop.f32.mrf.mxu2 }
 0x1cd   :  { %v1018_v22 = vadd.f32 %v1017_v59, %v998_v45 }
 0x1cf   :  { %v1077_v38 = vmul.f32 -1.442695, %v1018_v22 }
 0x1d1   :  { %1240 = vpow2.f32 %v1077_v38 }
 0x1d7   :  { %v1241_v46 = vpop.eup %1240 }
 0x1d8   :  { %v1023_v41 = vadd.f32 1.0, %v1241_v46 }
 0x1da   :  { %1242 = vrcp.f32 %v1023_v41  ;;  %v1035_v17 = vand.u32 2147483648, %v1023_v41  ;;  %v1033_v14 = vand.u32 2147483647, %v1023_v41  ;;  %vm1029_vm13 = vweird.f32 %v1023_v41 }
 0x1dc   :  { %v1036_v19 = vor.u32 1.1754944e-38, %v1035_v17  ;;  %vm1034_vm15 = vcmp.eq.f32.partialorder %v1033_v14, 8.507059e+37 }
 0x1e0   :  { %v1243_v54 = vpop.eup %1242 }
 0x1e1   :  { %v1025_v9 = vmul.f32 %v1243_v54, %v1023_v41  ;;  %vm1030_vm6 = vweird.f32 %v1243_v54 }
 0x1e2   :  { %vm1031_vm14 = vmor %vm1029_vm13, %vm1030_vm6 }
 0x1e3   :  { %v1026_v56 = vsub.f32 1.0, %v1025_v9 }
 0x1e5   :  { %v1027_v58 = vmul.f32 %v1243_v54, %v1026_v56 }
 0x1e7   :  { %v1028_v33 = vadd.f32 %v1243_v54, %v1027_v58 }
 0x1e9   :  { %v1032_v57 = vsel %vm1031_vm14, %v1243_v54, %v1028_v33 }
 0x1ea   :  { %v1037_v60 = vsel %vm1034_vm15, %v1036_v19, %v1032_v57 }
 0x1eb   :  { %1040 = vst.msk [vmem:[%s2418_s5] sm:$0xff] %vm1039_vm8, %v1037_v60 }

</bundles_post_ra>
